<compile_context>
chip_gen: v6e
topology: v6e:2x2x1
jax: 0.10.0
libtpu: 0.0.40
codegen_flags: <defaults>
</compile_context>

<pallas_src>
import functools

import jax
import jax.numpy as jnp
from jax import lax
from jax.experimental import pallas as pl
from jax.experimental.pallas import tpu as pltpu


# ----------------------------------------------------------------------------
# Pallas kernels
# ----------------------------------------------------------------------------
def _conv_mm_relu_kernel(p_ref, w_ref, b_ref, o_ref):
    """im2col conv as matmul: (M, K) @ (K, N) + bias, ReLU. One batch per step."""
    a = p_ref[0].astype(jnp.bfloat16)                              # (M, K)
    y = jnp.dot(a, w_ref[...], preferred_element_type=jnp.float32)
    y = jnp.maximum(y + b_ref[...], 0.0)
    o_ref[0] = y.astype(o_ref.dtype)


def conv_matmul_relu(patches, w_bf16, bias):
    """patches: (B, M, K) f32, w: (K, N) bf16, bias: (1, N) f32 -> (B, M, N)."""
    B, M, K = patches.shape
    N = w_bf16.shape[1]
    return pl.pallas_call(
        _conv_mm_relu_kernel,
        out_shape=jax.ShapeDtypeStruct((B, M, N), jnp.float32),
        grid=(B,),
        in_specs=[
            pl.BlockSpec((1, M, K), lambda i: (i, 0, 0)),
            pl.BlockSpec((K, N), lambda i: (0, 0)),
            pl.BlockSpec((1, N), lambda i: (0, 0)),
        ],
        out_specs=pl.BlockSpec((1, M, N), lambda i: (i, 0, 0)),
        compiler_params=pltpu.CompilerParams(dimension_semantics=("parallel",)),
    )(patches, w_bf16, bias)


def _fused_trsf_kernel(p2_ref, w2_ref, b2_ref, pos_ref, ln1g_ref, ln1b_ref,
                       wqkv_ref, bqkv_ref, wo_ref, bo_ref, ln2g_ref, ln2b_ref,
                       wm1_ref, bm1_ref, wm2_ref, bm2_ref, wh_ref, bh_ref,
                       o_ref, *, heads, scale, eps):
    """conv2-matmul + full transformer encoder layer + pool + head, per image."""
    bf16 = jnp.bfloat16
    f32 = jnp.float32
    S, D = pos_ref.shape

    def ln(x, g, b):
        mu = jnp.mean(x, axis=-1, keepdims=True)
        var = jnp.mean(jnp.square(x - mu), axis=-1, keepdims=True)
        return (x - mu) * lax.rsqrt(var + eps) * g + b

    # ---- conv2 (im2col matmul) + bias + ReLU + positional embedding ----
    patches = p2_ref[0].astype(bf16)                               # (S, Cin*kh*kw)
    tok = jnp.dot(patches, w2_ref[...], preferred_element_type=f32)
    tok = jnp.maximum(tok + b2_ref[...], 0.0) + pos_ref[...]       # (S, D) f32

    # ---- multi-head self-attention ----
    h = ln(tok, ln1g_ref[...], ln1b_ref[...])
    h_bf = h.astype(bf16)
    attn = jnp.zeros((S, D), f32)
    for hd in range(heads):                                        # static unroll
        q = jnp.dot(h_bf, wqkv_ref[hd], preferred_element_type=f32) + bqkv_ref[hd]
        k = (jnp.dot(h_bf, wqkv_ref[heads + hd], preferred_element_type=f32)
             + bqkv_ref[heads + hd])
        v = (jnp.dot(h_bf, wqkv_ref[2 * heads + hd], preferred_element_type=f32)
             + bqkv_ref[2 * heads + hd])
        # q @ k^T without an explicit in-kernel transpose (contract Dh axes).
        s = lax.dot_general(q.astype(bf16), k.astype(bf16),
                            (((1,), (1,)), ((), ())),
                            preferred_element_type=f32) * scale    # (S, S)
        m = jnp.max(s, axis=-1, keepdims=True)
        p = jnp.exp(s - m)
        p = p / jnp.sum(p, axis=-1, keepdims=True)                 # exact softmax
        oh = jnp.dot(p.astype(bf16), v.astype(bf16),
                     preferred_element_type=f32)                   # (S, Dh)
        # Per-head output projection slice; summing == concat(heads) @ W_o.
        attn = attn + jnp.dot(oh.astype(bf16), wo_ref[hd],
                              preferred_element_type=f32)
    x = tok + attn + bo_ref[...]

    # ---- MLP ----
    h2 = ln(x, ln2g_ref[...], ln2b_ref[...])
    m1 = jnp.dot(h2.astype(bf16), wm1_ref[...],
                 preferred_element_type=f32) + bm1_ref[...]
    # TODO(synk): PyTorch nn.GELU default is the exact erf form; tanh approx
    # is used here for guaranteed Mosaic lowering.
    m1 = jax.nn.gelu(m1, approximate=True)
    m2 = jnp.dot(m1.astype(bf16), wm2_ref[...],
                 preferred_element_type=f32) + bm2_ref[...]
    x = x + m2

    # ---- mean-pool + classification head (lane-padded to 128) ----
    pooled = jnp.mean(x, axis=0, keepdims=True)                    # (1, D)
    logits = jnp.dot(pooled.astype(bf16), wh_ref[...],
                     preferred_element_type=f32) + bh_ref[...]     # (1, 128)
    o_ref[0] = logits.astype(o_ref.dtype)


def fused_trsf(p2, w2, b2, pos, ln1g, ln1b, wqkv, bqkv, wo, bo,
               ln2g, ln2b, wm1, bm1, wm2, bm2, wh, bh, *, heads, scale):
    B, S, K2 = p2.shape
    kernel = functools.partial(_fused_trsf_kernel,
                               heads=heads, scale=scale, eps=1e-5)

    def full(arr):
        nd = arr.ndim
        return pl.BlockSpec(arr.shape, lambda i, _nd=nd: (0,) * _nd)

    shared = (w2, b2, pos, ln1g, ln1b, wqkv, bqkv, wo, bo,
              ln2g, ln2b, wm1, bm1, wm2, bm2, wh, bh)
    in_specs = [pl.BlockSpec((1, S, K2), lambda i: (i, 0, 0))]
    in_specs += [full(a) for a in shared]

    return pl.pallas_call(
        kernel,
        out_shape=jax.ShapeDtypeStruct((B, 1, 128), jnp.float32),
        grid=(B,),
        in_specs=in_specs,
        out_specs=pl.BlockSpec((1, 1, 128), lambda i: (i, 0, 0)),
        compiler_params=pltpu.CompilerParams(dimension_semantics=("parallel",)),
    )(p2, *shared)


# ----------------------------------------------------------------------------
# Parameters (synthetic, deterministic)
# ----------------------------------------------------------------------------
def init_params(key):
    ks = jax.random.split(key, 16)
    s = 0.02
    D, HID, S = 24, 96, 64
    return {
        "conv1_w": s * jax.random.normal(ks[0], (16, 3, 3, 3), jnp.float32),
        "conv1_b": jnp.zeros((16,), jnp.float32),
        "conv2_w": s * jax.random.normal(ks[1], (24, 16, 3, 3), jnp.float32),
        "conv2_b": jnp.zeros((24,), jnp.float32),
        "pos_emb": s * jax.random.normal(ks[2], (S, D), jnp.float32),
        "ln1_g": jnp.ones((D,), jnp.float32),
        "ln1_b": jnp.zeros((D,), jnp.float32),
        "w_qkv": s * jax.random.normal(ks[3], (D, 3 * D), jnp.float32),
        "b_qkv": jnp.zeros((3 * D,), jnp.float32),
        "w_o": s * jax.random.normal(ks[4], (D, D), jnp.float32),
        "b_o": jnp.zeros((D,), jnp.float32),
        "ln2_g": jnp.ones((D,), jnp.float32),
        "ln2_b": jnp.zeros((D,), jnp.float32),
        "w_mlp1": s * jax.random.normal(ks[5], (D, HID), jnp.float32),
        "b_mlp1": jnp.zeros((HID,), jnp.float32),
        "w_mlp2": s * jax.random.normal(ks[6], (HID, D), jnp.float32),
        "b_mlp2": jnp.zeros((D,), jnp.float32),
        "w_head": s * jax.random.normal(ks[7], (D, 2), jnp.float32),
        "b_head": jnp.zeros((2,), jnp.float32),
    }


# ----------------------------------------------------------------------------
# Forward pass (plain-JAX glue limited to im2col + one layout transpose)
# ----------------------------------------------------------------------------
def res_trsf_forward(params, images):
    B = images.shape[0]
    D, HEADS = 24, 2
    DH = D // HEADS

    # ---- backbone: NCHW (B,3,32,32) -> NHWC features, kept channel-last ----
    x = jnp.transpose(images, (0, 2, 3, 1))                        # (B,32,32,3)
    p1 = lax.conv_general_dilated_patches(
        x, (3, 3), (2, 2), ((1, 1), (1, 1)),
        dimension_numbers=("NHWC", "HWIO", "NHWC"))                # (B,16,16,27)
    H1, W1 = p1.shape[1], p1.shape[2]
    p1 = p1.reshape(B, H1 * W1, 27)

    w1 = params["conv1_w"].reshape(16, 27).T.astype(jnp.bfloat16)  # (27,16)
    b1 = params["conv1_b"].reshape(1, 16)
    y1 = conv_matmul_relu(p1, w1, b1)                              # (B,256,16)
    y1 = y1.reshape(B, H1, W1, 16)                                 # NHWC, free

    p2 = lax.conv_general_dilated_patches(
        y1, (3, 3), (2, 2), ((1, 1), (1, 1)),
        dimension_numbers=("NHWC", "HWIO", "NHWC"))                # (B,8,8,144)
    S = p2.shape[1] * p2.shape[2]                                  # 64 tokens
    p2 = p2.reshape(B, S, 144)

    # ---- pre-reshape / pre-cast weights for the fused kernel ----
    w2 = params["conv2_w"].reshape(D, 144).T.astype(jnp.bfloat16)  # (144,24)
    b2 = params["conv2_b"].reshape(1, D)
    pos = params["pos_emb"]
    ln1g = params["ln1_g"].reshape(1, D)
    ln1b = params["ln1_b"].reshape(1, D)
    # (D, 3D) -> (3*heads, D, Dh): [q_h0, q_h1, k_h0, k_h1, v_h0, v_h1]
    wqkv = (params["w_qkv"].T.reshape(3, HEADS, DH, D)
            .transpose(0, 1, 3, 2).reshape(3 * HEADS, D, DH).astype(jnp.bfloat16))
    bqkv = params["b_qkv"].reshape(3 * HEADS, 1, DH)
    wo = params["w_o"].reshape(HEADS, DH, D).astype(jnp.bfloat16)  # per-head rows
    bo = params["b_o"].reshape(1, D)
    ln2g = params["ln2_g"].reshape(1, D)
    ln2b = params["ln2_b"].reshape(1, D)
    wm1 = params["w_mlp1"].astype(jnp.bfloat16)
    bm1 = params["b_mlp1"].reshape(1, -1)
    wm2 = params["w_mlp2"].astype(jnp.bfloat16)
    bm2 = params["b_mlp2"].reshape(1, D)
    # head padded to 128 output lanes -> unmasked full-lane store in kernel
    wh = jnp.zeros((D, 128), jnp.float32).at[:, :2].set(params["w_head"])
    wh = wh.astype(jnp.bfloat16)
    bh = jnp.zeros((1, 128), jnp.float32).at[:, :2].set(
        params["b_head"].reshape(1, 2))

    out = fused_trsf(p2, w2, b2, pos, ln1g, ln1b, wqkv, bqkv, wo, bo,
                     ln2g, ln2b, wm1, bm1, wm2, bm2, wh, bh,
                     heads=HEADS, scale=1.0 / (DH ** 0.5))         # (B,1,128)
    return out[:, 0, :2]                                           # (B, 2)


if __name__ == "__main__":
    key = jax.random.PRNGKey(0)
    k_img, k_par = jax.random.split(key)
    images = jax.random.normal(k_img, (2, 3, 32, 32), jnp.float32)  # NCHW
    params = init_params(k_par)

    fwd = jax.jit(res_trsf_forward)
    out = fwd(params, images)
    jax.block_until_ready(out)
    assert out.shape == (2, 2) and out.dtype == jnp.float32
    print("KERNEL_OK")
</pallas_src>

<mosaic_0001>
module attributes {stable_mosaic.version = 11 : i64} {
  func.func @_conv_mm_relu_kernel(%arg0: i32, %arg1: memref<1x256x27xf32, #tpu.memory_space<vmem>>, %arg2: memref<27x16xbf16, #tpu.memory_space<vmem>>, %arg3: memref<1x16xf32, #tpu.memory_space<vmem>>, %arg4: memref<1x256x16xf32, #tpu.memory_space<vmem>>) attributes {dimension_semantics = [#tpu.dimension_semantics<parallel>], iteration_bounds = array<i64: 2>, scalar_prefetch = 0 : i64, scratch_operands = 0 : i64, tpu.core_type = #tpu.core_type<tc>, window_params = [{transform_indices = @transform_0, window_bounds = array<i64: 1, 256, 27>}, {pipeline_mode = #tpu.pipeline_mode<synchronous>, transform_indices = @transform_1, window_bounds = array<i64: 27, 16>}, {pipeline_mode = #tpu.pipeline_mode<synchronous>, transform_indices = @transform_2, window_bounds = array<i64: 1, 16>}, {transform_indices = @transform_3, window_bounds = array<i64: 1, 256, 16>}]} {
    %c0 = arith.constant 0 : index
    %c0_0 = arith.constant 0 : index
    %c0_1 = arith.constant 0 : index
    %0 = vector.load %arg1[%c0, %c0_0, %c0_1] : memref<1x256x27xf32, #tpu.memory_space<vmem>>, vector<1x256x27xf32>
    %1 = vector.shape_cast %0 : vector<1x256x27xf32> to vector<256x27xf32>
    %2 = arith.truncf %1 : vector<256x27xf32> to vector<256x27xbf16>
    %c0_2 = arith.constant 0 : index
    %c0_3 = arith.constant 0 : index
    %3 = vector.load %arg2[%c0_2, %c0_3] : memref<27x16xbf16, #tpu.memory_space<vmem>>, vector<27x16xbf16>
    %cst = arith.constant dense<0.000000e+00> : vector<256x16xf32>
    %4 = tpu.matmul %2, %3, %cst {dimension_numbers = #tpu.dot_dimension_numbers<[1], [0], [0], [1], [0, 0, 1, 1], [], []>} : vector<256x27xbf16>, vector<27x16xbf16>, vector<256x16xf32> -> vector<256x16xf32>
    %c0_4 = arith.constant 0 : index
    %c0_5 = arith.constant 0 : index
    %5 = vector.load %arg3[%c0_4, %c0_5] : memref<1x16xf32, #tpu.memory_space<vmem>>, vector<1x16xf32>
    %6 = vector.broadcast %5 : vector<1x16xf32> to vector<256x16xf32>
    %7 = arith.addf %4, %6 : vector<256x16xf32>
    %cst_6 = arith.constant 0.000000e+00 : f32
    %8 = vector.broadcast %cst_6 : f32 to vector<256x16xf32>
    %9 = arith.maximumf %7, %8 : vector<256x16xf32>
    %c0_7 = arith.constant 0 : index
    %c0_8 = arith.constant 0 : index
    %c0_9 = arith.constant 0 : index
    %10 = vector.load %arg4[%c0_7, %c0_8, %c0_9] : memref<1x256x16xf32, #tpu.memory_space<vmem>>, vector<1x256x16xf32>
    %11 = vector.shape_cast %10 : vector<1x256x16xf32> to vector<256x16xf32>
    %12 = vector.shape_cast %9 : vector<256x16xf32> to vector<1x256x16xf32>
    tpu.vector_store %arg4[%c0_7, %c0_8, %c0_9], %12 {strides = array<i32>} : memref<1x256x16xf32, #tpu.memory_space<vmem>>, vector<1x256x16xf32>,
    return
  }
  func.func @transform_0(%arg0: i32) -> (i32, i32, i32) {
    %c0_i32 = arith.constant 0 : i32
    %c0_i32_0 = arith.constant 0 : i32
    %c0_i32_1 = arith.constant 0 : i32
    return %arg0, %c0_i32, %c0_i32_0 : i32, i32, i32
  }
  func.func @transform_1(%arg0: i32) -> (i32, i32) {
    %c0_i32 = arith.constant 0 : i32
    %c0_i32_0 = arith.constant 0 : i32
    %c0_i32_1 = arith.constant 0 : i32
    return %c0_i32, %c0_i32_0 : i32, i32
  }
  func.func @transform_2(%arg0: i32) -> (i32, i32) {
    %c0_i32 = arith.constant 0 : i32
    %c0_i32_0 = arith.constant 0 : i32
    %c0_i32_1 = arith.constant 0 : i32
    return %c0_i32, %c0_i32_0 : i32, i32
  }
  func.func @transform_3(%arg0: i32) -> (i32, i32, i32) {
    %c0_i32 = arith.constant 0 : i32
    %c0_i32_0 = arith.constant 0 : i32
    %c0_i32_1 = arith.constant 0 : i32
    return %arg0, %c0_i32, %c0_i32_0 : i32, i32, i32
  }
}

module attributes {stable_mosaic.version = 11 : i64} {
  func.func @_fused_trsf_kernel(%arg0: i32, %arg1: memref<1x64x144xf32, #tpu.memory_space<vmem>>, %arg2: memref<144x24xbf16, #tpu.memory_space<vmem>>, %arg3: memref<1x24xf32, #tpu.memory_space<vmem>>, %arg4: memref<64x24xf32, #tpu.memory_space<vmem>>, %arg5: memref<1x24xf32, #tpu.memory_space<vmem>>, %arg6: memref<1x24xf32, #tpu.memory_space<vmem>>, %arg7: memref<6x24x12xbf16, #tpu.memory_space<vmem>>, %arg8: memref<6x1x12xf32, #tpu.memory_space<vmem>>, %arg9: memref<2x12x24xbf16, #tpu.memory_space<vmem>>, %arg10: memref<1x24xf32, #tpu.memory_space<vmem>>, %arg11: memref<1x24xf32, #tpu.memory_space<vmem>>, %arg12: memref<1x24xf32, #tpu.memory_space<vmem>>, %arg13: memref<24x96xbf16, #tpu.memory_space<vmem>>, %arg14: memref<1x96xf32, #tpu.memory_space<vmem>>, %arg15: memref<96x24xbf16, #tpu.memory_space<vmem>>, %arg16: memref<1x24xf32, #tpu.memory_space<vmem>>, %arg17: memref<24x128xbf16, #tpu.memory_space<vmem>>, %arg18: memref<1x128xf32, #tpu.memory_space<vmem>>, %arg19: memref<1x1x128xf32, #tpu.memory_space<vmem>>) attributes {dimension_semantics = [#tpu.dimension_semantics<parallel>], iteration_bounds = array<i64: 2>, scalar_prefetch = 0 : i64, scratch_operands = 0 : i64, tpu.core_type = #tpu.core_type<tc>, window_params = [{transform_indices = @transform_0, window_bounds = array<i64: 1, 64, 144>}, {pipeline_mode = #tpu.pipeline_mode<synchronous>, transform_indices = @transform_1, window_bounds = array<i64: 144, 24>}, {pipeline_mode = #tpu.pipeline_mode<synchronous>, transform_indices = @transform_2, window_bounds = array<i64: 1, 24>}, {pipeline_mode = #tpu.pipeline_mode<synchronous>, transform_indices = @transform_3, window_bounds = array<i64: 64, 24>}, {pipeline_mode = #tpu.pipeline_mode<synchronous>, transform_indices = @transform_4, window_bounds = array<i64: 1, 24>}, {pipeline_mode = #tpu.pipeline_mode<synchronous>, transform_indices = @transform_5, window_bounds = array<i64: 1, 24>}, {pipeline_mode = #tpu.pipeline_mode<synchronous>, transform_indices = @transform_6, window_bounds = array<i64: 6, 24, 12>}, {pipeline_mode = #tpu.pipeline_mode<synchronous>, transform_indices = @transform_7, window_bounds = array<i64: 6, 1, 12>}, {pipeline_mode = #tpu.pipeline_mode<synchronous>, transform_indices = @transform_8, window_bounds = array<i64: 2, 12, 24>}, {pipeline_mode = #tpu.pipeline_mode<synchronous>, transform_indices = @transform_9, window_bounds = array<i64: 1, 24>}, {pipeline_mode = #tpu.pipeline_mode<synchronous>, transform_indices = @transform_10, window_bounds = array<i64: 1, 24>}, {pipeline_mode = #tpu.pipeline_mode<synchronous>, transform_indices = @transform_11, window_bounds = array<i64: 1, 24>}, {pipeline_mode = #tpu.pipeline_mode<synchronous>, transform_indices = @transform_12, window_bounds = array<i64: 24, 96>}, {pipeline_mode = #tpu.pipeline_mode<synchronous>, transform_indices = @transform_13, window_bounds = array<i64: 1, 96>}, {pipeline_mode = #tpu.pipeline_mode<synchronous>, transform_indices = @transform_14, window_bounds = array<i64: 96, 24>}, {pipeline_mode = #tpu.pipeline_mode<synchronous>, transform_indices = @transform_15, window_bounds = array<i64: 1, 24>}, {pipeline_mode = #tpu.pipeline_mode<synchronous>, transform_indices = @transform_16, window_bounds = array<i64: 24, 128>}, {pipeline_mode = #tpu.pipeline_mode<synchronous>, transform_indices = @transform_17, window_bounds = array<i64: 1, 128>}, {transform_indices = @transform_18, window_bounds = array<i64: 1, 1, 128>}]} {
    %c0 = arith.constant 0 : index
    %c0_0 = arith.constant 0 : index
    %c0_1 = arith.constant 0 : index
    %0 = vector.load %arg1[%c0, %c0_0, %c0_1] : memref<1x64x144xf32, #tpu.memory_space<vmem>>, vector<1x64x144xf32>
    %1 = vector.shape_cast %0 : vector<1x64x144xf32> to vector<64x144xf32>
    %2 = arith.truncf %1 : vector<64x144xf32> to vector<64x144xbf16>
    %c0_2 = arith.constant 0 : index
    %c0_3 = arith.constant 0 : index
    %3 = vector.load %arg2[%c0_2, %c0_3] : memref<144x24xbf16, #tpu.memory_space<vmem>>, vector<144x24xbf16>
    %cst = arith.constant dense<0.000000e+00> : vector<64x24xf32>
    %4 = tpu.matmul %2, %3, %cst {dimension_numbers = #tpu.dot_dimension_numbers<[1], [0], [0], [1], [0, 0, 1, 1], [], []>} : vector<64x144xbf16>, vector<144x24xbf16>, vector<64x24xf32> -> vector<64x24xf32>
    %c0_4 = arith.constant 0 : index
    %c0_5 = arith.constant 0 : index
    %5 = vector.load %arg3[%c0_4, %c0_5] : memref<1x24xf32, #tpu.memory_space<vmem>>, vector<1x24xf32>
    %6 = vector.broadcast %5 : vector<1x24xf32> to vector<64x24xf32>
    %7 = arith.addf %4, %6 : vector<64x24xf32>
    %cst_6 = arith.constant 0.000000e+00 : f32
    %8 = vector.broadcast %cst_6 : f32 to vector<64x24xf32>
    %9 = arith.maximumf %7, %8 : vector<64x24xf32>
    %c0_7 = arith.constant 0 : index
    %c0_8 = arith.constant 0 : index
    %10 = vector.load %arg4[%c0_7, %c0_8] : memref<64x24xf32, #tpu.memory_space<vmem>>, vector<64x24xf32>
    %11 = arith.addf %9, %10 : vector<64x24xf32>
    %c0_9 = arith.constant 0 : index
    %c0_10 = arith.constant 0 : index
    %12 = vector.load %arg5[%c0_9, %c0_10] : memref<1x24xf32, #tpu.memory_space<vmem>>, vector<1x24xf32>
    %c0_11 = arith.constant 0 : index
    %c0_12 = arith.constant 0 : index
    %13 = vector.load %arg6[%c0_11, %c0_12] : memref<1x24xf32, #tpu.memory_space<vmem>>, vector<1x24xf32>
    %cst_13 = arith.constant dense<0.000000e+00> : vector<64xf32>
    %14 = vector.multi_reduction <add>, %11, %cst_13 [1] : vector<64x24xf32> to vector<64xf32>
    %15 = vector.shape_cast %14 : vector<64xf32> to vector<64x1xf32>
    %cst_14 = arith.constant 2.400000e+01 : f32
    %16 = vector.broadcast %cst_14 : f32 to vector<64x1xf32>
    %17 = arith.divf %15, %16 : vector<64x1xf32>
    %18 = vector.broadcast %17 : vector<64x1xf32> to vector<64x24xf32>
    %19 = arith.subf %11, %18 : vector<64x24xf32>
    %20 = arith.mulf %19, %19 : vector<64x24xf32>
    %cst_15 = arith.constant dense<0.000000e+00> : vector<64xf32>
    %21 = vector.multi_reduction <add>, %20, %cst_15 [1] : vector<64x24xf32> to vector<64xf32>
    %22 = vector.shape_cast %21 : vector<64xf32> to vector<64x1xf32>
    %cst_16 = arith.constant 2.400000e+01 : f32
    %23 = vector.broadcast %cst_16 : f32 to vector<64x1xf32>
    %24 = arith.divf %22, %23 : vector<64x1xf32>
    %25 = vector.broadcast %17 : vector<64x1xf32> to vector<64x24xf32>
    %26 = arith.subf %11, %25 : vector<64x24xf32>
    %cst_17 = arith.constant 9.99999974E-6 : f32
    %27 = vector.broadcast %cst_17 : f32 to vector<64x1xf32>
    %28 = arith.addf %24, %27 : vector<64x1xf32>
    %29 = math.rsqrt %28 : vector<64x1xf32>
    %30 = vector.broadcast %29 : vector<64x1xf32> to vector<64x24xf32>
    %31 = arith.mulf %26, %30 : vector<64x24xf32>
    %32 = vector.broadcast %12 : vector<1x24xf32> to vector<64x24xf32>
    %33 = arith.mulf %31, %32 : vector<64x24xf32>
    %34 = vector.broadcast %13 : vector<1x24xf32> to vector<64x24xf32>
    %35 = arith.addf %33, %34 : vector<64x24xf32>
    %36 = arith.truncf %35 : vector<64x24xf32> to vector<64x24xbf16>
    %cst_18 = arith.constant 0.000000e+00 : f32
    %37 = vector.broadcast %cst_18 : f32 to vector<64x24xf32>
    %c0_19 = arith.constant 0 : index
    %c0_20 = arith.constant 0 : index
    %c0_21 = arith.constant 0 : index
    %38 = vector.load %arg7[%c0_19, %c0_20, %c0_21] : memref<6x24x12xbf16, #tpu.memory_space<vmem>>, vector<1x24x12xbf16>
    %39 = vector.shape_cast %38 : vector<1x24x12xbf16> to vector<24x12xbf16>
    %cst_22 = arith.constant dense<0.000000e+00> : vector<64x12xf32>
    %40 = tpu.matmul %36, %39, %cst_22 {dimension_numbers = #tpu.dot_dimension_numbers<[1], [0], [0], [1], [0, 0, 1, 1], [], []>} : vector<64x24xbf16>, vector<24x12xbf16>, vector<64x12xf32> -> vector<64x12xf32>
    %c0_23 = arith.constant 0 : index
    %c0_24 = arith.constant 0 : index
    %c0_25 = arith.constant 0 : index
    %41 = vector.load %arg8[%c0_23, %c0_24, %c0_25] : memref<6x1x12xf32, #tpu.memory_space<vmem>>, vector<1x1x12xf32>
    %42 = vector.shape_cast %41 : vector<1x1x12xf32> to vector<1x12xf32>
    %43 = vector.broadcast %42 : vector<1x12xf32> to vector<64x12xf32>
    %44 = arith.addf %40, %43 : vector<64x12xf32>
    %c2 = arith.constant 2 : index
    %c0_26 = arith.constant 0 : index
    %c0_27 = arith.constant 0 : index
    %45 = vector.load %arg7[%c2, %c0_26, %c0_27] : memref<6x24x12xbf16, #tpu.memory_space<vmem>>, vector<1x24x12xbf16>
    %46 = vector.shape_cast %45 : vector<1x24x12xbf16> to vector<24x12xbf16>
    %cst_28 = arith.constant dense<0.000000e+00> : vector<64x12xf32>
    %47 = tpu.matmul %36, %46, %cst_28 {dimension_numbers = #tpu.dot_dimension_numbers<[1], [0], [0], [1], [0, 0, 1, 1], [], []>} : vector<64x24xbf16>, vector<24x12xbf16>, vector<64x12xf32> -> vector<64x12xf32>
    %c2_29 = arith.constant 2 : index
    %c0_30 = arith.constant 0 : index
    %c0_31 = arith.constant 0 : index
    %48 = vector.load %arg8[%c2_29, %c0_30, %c0_31] : memref<6x1x12xf32, #tpu.memory_space<vmem>>, vector<1x1x12xf32>
    %49 = vector.shape_cast %48 : vector<1x1x12xf32> to vector<1x12xf32>
    %50 = vector.broadcast %49 : vector<1x12xf32> to vector<64x12xf32>
    %51 = arith.addf %47, %50 : vector<64x12xf32>
    %c4 = arith.constant 4 : index
    %c0_32 = arith.constant 0 : index
    %c0_33 = arith.constant 0 : index
    %52 = vector.load %arg7[%c4, %c0_32, %c0_33] : memref<6x24x12xbf16, #tpu.memory_space<vmem>>, vector<1x24x12xbf16>
    %53 = vector.shape_cast %52 : vector<1x24x12xbf16> to vector<24x12xbf16>
    %cst_34 = arith.constant dense<0.000000e+00> : vector<64x12xf32>
    %54 = tpu.matmul %36, %53, %cst_34 {dimension_numbers = #tpu.dot_dimension_numbers<[1], [0], [0], [1], [0, 0, 1, 1], [], []>} : vector<64x24xbf16>, vector<24x12xbf16>, vector<64x12xf32> -> vector<64x12xf32>
    %c4_35 = arith.constant 4 : index
    %c0_36 = arith.constant 0 : index
    %c0_37 = arith.constant 0 : index
    %55 = vector.load %arg8[%c4_35, %c0_36, %c0_37] : memref<6x1x12xf32, #tpu.memory_space<vmem>>, vector<1x1x12xf32>
    %56 = vector.shape_cast %55 : vector<1x1x12xf32> to vector<1x12xf32>
    %57 = vector.broadcast %56 : vector<1x12xf32> to vector<64x12xf32>
    %58 = arith.addf %54, %57 : vector<64x12xf32>
    %59 = arith.truncf %44 : vector<64x12xf32> to vector<64x12xbf16>
    %60 = arith.truncf %51 : vector<64x12xf32> to vector<64x12xbf16>
    %cst_38 = arith.constant dense<0.000000e+00> : vector<64x64xf32>
    %61 = tpu.matmul %59, %60, %cst_38 {dimension_numbers = #tpu.dot_dimension_numbers<[1], [1], [0], [0], [0, 0, 1, 0], [], []>} : vector<64x12xbf16>, vector<64x12xbf16>, vector<64x64xf32> -> vector<64x64xf32>
    %cst_39 = arith.constant 0.288675129 : f32
    %62 = vector.broadcast %cst_39 : f32 to vector<64x64xf32>
    %63 = arith.mulf %61, %62 : vector<64x64xf32>
    %cst_40 = arith.constant dense<0xFF800000> : vector<64xf32>
    %64 = vector.multi_reduction <maximumf>, %63, %cst_40 [1] : vector<64x64xf32> to vector<64xf32>
    %65 = vector.shape_cast %64 : vector<64xf32> to vector<64x1xf32>
    %66 = vector.broadcast %65 : vector<64x1xf32> to vector<64x64xf32>
    %67 = arith.subf %63, %66 : vector<64x64xf32>
    %68 = math.exp %67 : vector<64x64xf32>
    %cst_41 = arith.constant dense<0.000000e+00> : vector<64xf32>
    %69 = vector.multi_reduction <add>, %68, %cst_41 [1] : vector<64x64xf32> to vector<64xf32>
    %70 = vector.shape_cast %69 : vector<64xf32> to vector<64x1xf32>
    %71 = vector.broadcast %70 : vector<64x1xf32> to vector<64x64xf32>
    %72 = arith.divf %68, %71 : vector<64x64xf32>
    %73 = arith.truncf %72 : vector<64x64xf32> to vector<64x64xbf16>
    %74 = arith.truncf %58 : vector<64x12xf32> to vector<64x12xbf16>
    %cst_42 = arith.constant dense<0.000000e+00> : vector<64x12xf32>
    %75 = tpu.matmul %73, %74, %cst_42 {dimension_numbers = #tpu.dot_dimension_numbers<[1], [0], [0], [1], [0, 0, 1, 1], [], []>} : vector<64x64xbf16>, vector<64x12xbf16>, vector<64x12xf32> -> vector<64x12xf32>
    %76 = arith.truncf %75 : vector<64x12xf32> to vector<64x12xbf16>
    %c0_43 = arith.constant 0 : index
    %c0_44 = arith.constant 0 : index
    %c0_45 = arith.constant 0 : index
    %77 = vector.load %arg9[%c0_43, %c0_44, %c0_45] : memref<2x12x24xbf16, #tpu.memory_space<vmem>>, vector<1x12x24xbf16>
    %78 = vector.shape_cast %77 : vector<1x12x24xbf16> to vector<12x24xbf16>
    %cst_46 = arith.constant dense<0.000000e+00> : vector<64x24xf32>
    %79 = tpu.matmul %76, %78, %cst_46 {dimension_numbers = #tpu.dot_dimension_numbers<[1], [0], [0], [1], [0, 0, 1, 1], [], []>} : vector<64x12xbf16>, vector<12x24xbf16>, vector<64x24xf32> -> vector<64x24xf32>
    %80 = arith.addf %37, %79 : vector<64x24xf32>
    %c1 = arith.constant 1 : index
    %c0_47 = arith.constant 0 : index
    %c0_48 = arith.constant 0 : index
    %81 = vector.load %arg7[%c1, %c0_47, %c0_48] : memref<6x24x12xbf16, #tpu.memory_space<vmem>>, vector<1x24x12xbf16>
    %82 = vector.shape_cast %81 : vector<1x24x12xbf16> to vector<24x12xbf16>
    %cst_49 = arith.constant dense<0.000000e+00> : vector<64x12xf32>
    %83 = tpu.matmul %36, %82, %cst_49 {dimension_numbers = #tpu.dot_dimension_numbers<[1], [0], [0], [1], [0, 0, 1, 1], [], []>} : vector<64x24xbf16>, vector<24x12xbf16>, vector<64x12xf32> -> vector<64x12xf32>
    %c1_50 = arith.constant 1 : index
    %c0_51 = arith.constant 0 : index
    %c0_52 = arith.constant 0 : index
    %84 = vector.load %arg8[%c1_50, %c0_51, %c0_52] : memref<6x1x12xf32, #tpu.memory_space<vmem>>, vector<1x1x12xf32>
    %85 = vector.shape_cast %84 : vector<1x1x12xf32> to vector<1x12xf32>
    %86 = vector.broadcast %85 : vector<1x12xf32> to vector<64x12xf32>
    %87 = arith.addf %83, %86 : vector<64x12xf32>
    %c3 = arith.constant 3 : index
    %c0_53 = arith.constant 0 : index
    %c0_54 = arith.constant 0 : index
    %88 = vector.load %arg7[%c3, %c0_53, %c0_54] : memref<6x24x12xbf16, #tpu.memory_space<vmem>>, vector<1x24x12xbf16>
    %89 = vector.shape_cast %88 : vector<1x24x12xbf16> to vector<24x12xbf16>
    %cst_55 = arith.constant dense<0.000000e+00> : vector<64x12xf32>
    %90 = tpu.matmul %36, %89, %cst_55 {dimension_numbers = #tpu.dot_dimension_numbers<[1], [0], [0], [1], [0, 0, 1, 1], [], []>} : vector<64x24xbf16>, vector<24x12xbf16>, vector<64x12xf32> -> vector<64x12xf32>
    %c3_56 = arith.constant 3 : index
    %c0_57 = arith.constant 0 : index
    %c0_58 = arith.constant 0 : index
    %91 = vector.load %arg8[%c3_56, %c0_57, %c0_58] : memref<6x1x12xf32, #tpu.memory_space<vmem>>, vector<1x1x12xf32>
    %92 = vector.shape_cast %91 : vector<1x1x12xf32> to vector<1x12xf32>
    %93 = vector.broadcast %92 : vector<1x12xf32> to vector<64x12xf32>
    %94 = arith.addf %90, %93 : vector<64x12xf32>
    %c5 = arith.constant 5 : index
    %c0_59 = arith.constant 0 : index
    %c0_60 = arith.constant 0 : index
    %95 = vector.load %arg7[%c5, %c0_59, %c0_60] : memref<6x24x12xbf16, #tpu.memory_space<vmem>>, vector<1x24x12xbf16>
    %96 = vector.shape_cast %95 : vector<1x24x12xbf16> to vector<24x12xbf16>
    %cst_61 = arith.constant dense<0.000000e+00> : vector<64x12xf32>
    %97 = tpu.matmul %36, %96, %cst_61 {dimension_numbers = #tpu.dot_dimension_numbers<[1], [0], [0], [1], [0, 0, 1, 1], [], []>} : vector<64x24xbf16>, vector<24x12xbf16>, vector<64x12xf32> -> vector<64x12xf32>
    %c5_62 = arith.constant 5 : index
    %c0_63 = arith.constant 0 : index
    %c0_64 = arith.constant 0 : index
    %98 = vector.load %arg8[%c5_62, %c0_63, %c0_64] : memref<6x1x12xf32, #tpu.memory_space<vmem>>, vector<1x1x12xf32>
    %99 = vector.shape_cast %98 : vector<1x1x12xf32> to vector<1x12xf32>
    %100 = vector.broadcast %99 : vector<1x12xf32> to vector<64x12xf32>
    %101 = arith.addf %97, %100 : vector<64x12xf32>
    %102 = arith.truncf %87 : vector<64x12xf32> to vector<64x12xbf16>
    %103 = arith.truncf %94 : vector<64x12xf32> to vector<64x12xbf16>
    %cst_65 = arith.constant dense<0.000000e+00> : vector<64x64xf32>
    %104 = tpu.matmul %102, %103, %cst_65 {dimension_numbers = #tpu.dot_dimension_numbers<[1], [1], [0], [0], [0, 0, 1, 0], [], []>} : vector<64x12xbf16>, vector<64x12xbf16>, vector<64x64xf32> -> vector<64x64xf32>
    %cst_66 = arith.constant 0.288675129 : f32
    %105 = vector.broadcast %cst_66 : f32 to vector<64x64xf32>
    %106 = arith.mulf %104, %105 : vector<64x64xf32>
    %cst_67 = arith.constant dense<0xFF800000> : vector<64xf32>
    %107 = vector.multi_reduction <maximumf>, %106, %cst_67 [1] : vector<64x64xf32> to vector<64xf32>
    %108 = vector.shape_cast %107 : vector<64xf32> to vector<64x1xf32>
    %109 = vector.broadcast %108 : vector<64x1xf32> to vector<64x64xf32>
    %110 = arith.subf %106, %109 : vector<64x64xf32>
    %111 = math.exp %110 : vector<64x64xf32>
    %cst_68 = arith.constant dense<0.000000e+00> : vector<64xf32>
    %112 = vector.multi_reduction <add>, %111, %cst_68 [1] : vector<64x64xf32> to vector<64xf32>
    %113 = vector.shape_cast %112 : vector<64xf32> to vector<64x1xf32>
    %114 = vector.broadcast %113 : vector<64x1xf32> to vector<64x64xf32>
    %115 = arith.divf %111, %114 : vector<64x64xf32>
    %116 = arith.truncf %115 : vector<64x64xf32> to vector<64x64xbf16>
    %117 = arith.truncf %101 : vector<64x12xf32> to vector<64x12xbf16>
    %cst_69 = arith.constant dense<0.000000e+00> : vector<64x12xf32>
    %118 = tpu.matmul %116, %117, %cst_69 {dimension_numbers = #tpu.dot_dimension_numbers<[1], [0], [0], [1], [0, 0, 1, 1], [], []>} : vector<64x64xbf16>, vector<64x12xbf16>, vector<64x12xf32> -> vector<64x12xf32>
    %119 = arith.truncf %118 : vector<64x12xf32> to vector<64x12xbf16>
    %c1_70 = arith.constant 1 : index
    %c0_71 = arith.constant 0 : index
    %c0_72 = arith.constant 0 : index
    %120 = vector.load %arg9[%c1_70, %c0_71, %c0_72] : memref<2x12x24xbf16, #tpu.memory_space<vmem>>, vector<1x12x24xbf16>
    %121 = vector.shape_cast %120 : vector<1x12x24xbf16> to vector<12x24xbf16>
    %cst_73 = arith.constant dense<0.000000e+00> : vector<64x24xf32>
    %122 = tpu.matmul %119, %121, %cst_73 {dimension_numbers = #tpu.dot_dimension_numbers<[1], [0], [0], [1], [0, 0, 1, 1], [], []>} : vector<64x12xbf16>, vector<12x24xbf16>, vector<64x24xf32> -> vector<64x24xf32>
    %123 = arith.addf %80, %122 : vector<64x24xf32>
    %124 = arith.addf %11, %123 : vector<64x24xf32>
    %c0_74 = arith.constant 0 : index
    %c0_75 = arith.constant 0 : index
    %125 = vector.load %arg10[%c0_74, %c0_75] : memref<1x24xf32, #tpu.memory_space<vmem>>, vector<1x24xf32>
    %126 = vector.broadcast %125 : vector<1x24xf32> to vector<64x24xf32>
    %127 = arith.addf %124, %126 : vector<64x24xf32>
    %c0_76 = arith.constant 0 : index
    %c0_77 = arith.constant 0 : index
    %128 = vector.load %arg11[%c0_76, %c0_77] : memref<1x24xf32, #tpu.memory_space<vmem>>, vector<1x24xf32>
    %c0_78 = arith.constant 0 : index
    %c0_79 = arith.constant 0 : index
    %129 = vector.load %arg12[%c0_78, %c0_79] : memref<1x24xf32, #tpu.memory_space<vmem>>, vector<1x24xf32>
    %cst_80 = arith.constant dense<0.000000e+00> : vector<64xf32>
    %130 = vector.multi_reduction <add>, %127, %cst_80 [1] : vector<64x24xf32> to vector<64xf32>
    %131 = vector.shape_cast %130 : vector<64xf32> to vector<64x1xf32>
    %cst_81 = arith.constant 2.400000e+01 : f32
    %132 = vector.broadcast %cst_81 : f32 to vector<64x1xf32>
    %133 = arith.divf %131, %132 : vector<64x1xf32>
    %134 = vector.broadcast %133 : vector<64x1xf32> to vector<64x24xf32>
    %135 = arith.subf %127, %134 : vector<64x24xf32>
    %136 = arith.mulf %135, %135 : vector<64x24xf32>
    %cst_82 = arith.constant dense<0.000000e+00> : vector<64xf32>
    %137 = vector.multi_reduction <add>, %136, %cst_82 [1] : vector<64x24xf32> to vector<64xf32>
    %138 = vector.shape_cast %137 : vector<64xf32> to vector<64x1xf32>
    %cst_83 = arith.constant 2.400000e+01 : f32
    %139 = vector.broadcast %cst_83 : f32 to vector<64x1xf32>
    %140 = arith.divf %138, %139 : vector<64x1xf32>
    %141 = vector.broadcast %133 : vector<64x1xf32> to vector<64x24xf32>
    %142 = arith.subf %127, %141 : vector<64x24xf32>
    %cst_84 = arith.constant 9.99999974E-6 : f32
    %143 = vector.broadcast %cst_84 : f32 to vector<64x1xf32>
    %144 = arith.addf %140, %143 : vector<64x1xf32>
    %145 = math.rsqrt %144 : vector<64x1xf32>
    %146 = vector.broadcast %145 : vector<64x1xf32> to vector<64x24xf32>
    %147 = arith.mulf %142, %146 : vector<64x24xf32>
    %148 = vector.broadcast %128 : vector<1x24xf32> to vector<64x24xf32>
    %149 = arith.mulf %147, %148 : vector<64x24xf32>
    %150 = vector.broadcast %129 : vector<1x24xf32> to vector<64x24xf32>
    %151 = arith.addf %149, %150 : vector<64x24xf32>
    %152 = arith.truncf %151 : vector<64x24xf32> to vector<64x24xbf16>
    %c0_85 = arith.constant 0 : index
    %c0_86 = arith.constant 0 : index
    %153 = vector.load %arg13[%c0_85, %c0_86] : memref<24x96xbf16, #tpu.memory_space<vmem>>, vector<24x96xbf16>
    %cst_87 = arith.constant dense<0.000000e+00> : vector<64x96xf32>
    %154 = tpu.matmul %152, %153, %cst_87 {dimension_numbers = #tpu.dot_dimension_numbers<[1], [0], [0], [1], [0, 0, 1, 1], [], []>} : vector<64x24xbf16>, vector<24x96xbf16>, vector<64x96xf32> -> vector<64x96xf32>
    %c0_88 = arith.constant 0 : index
    %c0_89 = arith.constant 0 : index
    %155 = vector.load %arg14[%c0_88, %c0_89] : memref<1x96xf32, #tpu.memory_space<vmem>>, vector<1x96xf32>
    %156 = vector.broadcast %155 : vector<1x96xf32> to vector<64x96xf32>
    %157 = arith.addf %154, %156 : vector<64x96xf32>
    %158 = arith.mulf %157, %157 : vector<64x96xf32>
    %159 = arith.mulf %157, %158 : vector<64x96xf32>
    %cst_90 = arith.constant 4.471500e-02 : f32
    %160 = vector.broadcast %cst_90 : f32 to vector<64x96xf32>
    %161 = arith.mulf %160, %159 : vector<64x96xf32>
    %162 = arith.addf %157, %161 : vector<64x96xf32>
    %cst_91 = arith.constant 0.797884583 : f32
    %163 = vector.broadcast %cst_91 : f32 to vector<64x96xf32>
    %164 = arith.mulf %163, %162 : vector<64x96xf32>
    %165 = math.tanh %164 : vector<64x96xf32>
    %cst_92 = arith.constant 1.000000e+00 : f32
    %166 = vector.broadcast %cst_92 : f32 to vector<64x96xf32>
    %167 = arith.addf %166, %165 : vector<64x96xf32>
    %cst_93 = arith.constant 5.000000e-01 : f32
    %168 = vector.broadcast %cst_93 : f32 to vector<64x96xf32>
    %169 = arith.mulf %168, %167 : vector<64x96xf32>
    %170 = arith.mulf %157, %169 : vector<64x96xf32>
    %171 = arith.truncf %170 : vector<64x96xf32> to vector<64x96xbf16>
    %c0_94 = arith.constant 0 : index
    %c0_95 = arith.constant 0 : index
    %172 = vector.load %arg15[%c0_94, %c0_95] : memref<96x24xbf16, #tpu.memory_space<vmem>>, vector<96x24xbf16>
    %cst_96 = arith.constant dense<0.000000e+00> : vector<64x24xf32>
    %173 = tpu.matmul %171, %172, %cst_96 {dimension_numbers = #tpu.dot_dimension_numbers<[1], [0], [0], [1], [0, 0, 1, 1], [], []>} : vector<64x96xbf16>, vector<96x24xbf16>, vector<64x24xf32> -> vector<64x24xf32>
    %c0_97 = arith.constant 0 : index
    %c0_98 = arith.constant 0 : index
    %174 = vector.load %arg16[%c0_97, %c0_98] : memref<1x24xf32, #tpu.memory_space<vmem>>, vector<1x24xf32>
    %175 = vector.broadcast %174 : vector<1x24xf32> to vector<64x24xf32>
    %176 = arith.addf %173, %175 : vector<64x24xf32>
    %177 = arith.addf %127, %176 : vector<64x24xf32>
    %cst_99 = arith.constant dense<0.000000e+00> : vector<24xf32>
    %178 = vector.multi_reduction <add>, %177, %cst_99 [0] : vector<64x24xf32> to vector<24xf32>
    %179 = vector.shape_cast %178 : vector<24xf32> to vector<1x24xf32>
    %cst_100 = arith.constant 6.400000e+01 : f32
    %180 = vector.broadcast %cst_100 : f32 to vector<1x24xf32>
    %181 = arith.divf %179, %180 : vector<1x24xf32>
    %182 = arith.truncf %181 : vector<1x24xf32> to vector<1x24xbf16>
    %c0_101 = arith.constant 0 : index
    %c0_102 = arith.constant 0 : index
    %183 = vector.load %arg17[%c0_101, %c0_102] : memref<24x128xbf16, #tpu.memory_space<vmem>>, vector<24x128xbf16>
    %cst_103 = arith.constant dense<0.000000e+00> : vector<1x128xf32>
    %184 = tpu.matmul %182, %183, %cst_103 {dimension_numbers = #tpu.dot_dimension_numbers<[1], [0], [0], [1], [0, 0, 1, 1], [], []>} : vector<1x24xbf16>, vector<24x128xbf16>, vector<1x128xf32> -> vector<1x128xf32>
    %c0_104 = arith.constant 0 : index
    %c0_105 = arith.constant 0 : index
    %185 = vector.load %arg18[%c0_104, %c0_105] : memref<1x128xf32, #tpu.memory_space<vmem>>, vector<1x128xf32>
    %186 = arith.addf %184, %185 : vector<1x128xf32>
    %c0_106 = arith.constant 0 : index
    %c0_107 = arith.constant 0 : index
    %c0_108 = arith.constant 0 : index
    %187 = vector.load %arg19[%c0_106, %c0_107, %c0_108] : memref<1x1x128xf32, #tpu.memory_space<vmem>>, vector<1x1x128xf32>
    %188 = vector.shape_cast %187 : vector<1x1x128xf32> to vector<1x128xf32>
    %189 = vector.shape_cast %186 : vector<1x128xf32> to vector<1x1x128xf32>
    tpu.vector_store %arg19[%c0_106, %c0_107, %c0_108], %189 {strides = array<i32>} : memref<1x1x128xf32, #tpu.memory_space<vmem>>, vector<1x1x128xf32>,
    return
  }
  func.func @transform_0(%arg0: i32) -> (i32, i32, i32) {
    %c0_i32 = arith.constant 0 : i32
    %c0_i32_0 = arith.constant 0 : i32
    %c0_i32_1 = arith.constant 0 : i32
    return %arg0, %c0_i32, %c0_i32_0 : i32, i32, i32
  }
  func.func @transform_1(%arg0: i32) -> (i32, i32) {
    %c0_i32 = arith.constant 0 : i32
    %c0_i32_0 = arith.constant 0 : i32
    %c0_i32_1 = arith.constant 0 : i32
    return %c0_i32, %c0_i32_0 : i32, i32
  }
  func.func @transform_2(%arg0: i32) -> (i32, i32) {
    %c0_i32 = arith.constant 0 : i32
    %c0_i32_0 = arith.constant 0 : i32
    %c0_i32_1 = arith.constant 0 : i32
    return %c0_i32, %c0_i32_0 : i32, i32
  }
  func.func @transform_3(%arg0: i32) -> (i32, i32) {
    %c0_i32 = arith.constant 0 : i32
    %c0_i32_0 = arith.constant 0 : i32
    %c0_i32_1 = arith.constant 0 : i32
    return %c0_i32, %c0_i32_0 : i32, i32
  }
  func.func @transform_4(%arg0: i32) -> (i32, i32) {
    %c0_i32 = arith.constant 0 : i32
    %c0_i32_0 = arith.constant 0 : i32
    %c0_i32_1 = arith.constant 0 : i32
    return %c0_i32, %c0_i32_0 : i32, i32
  }
  func.func @transform_5(%arg0: i32) -> (i32, i32) {
    %c0_i32 = arith.constant 0 : i32
    %c0_i32_0 = arith.constant 0 : i32
    %c0_i32_1 = arith.constant 0 : i32
    return %c0_i32, %c0_i32_0 : i32, i32
  }
  func.func @transform_6(%arg0: i32) -> (i32, i32, i32) {
    %c0_i32 = arith.constant 0 : i32
    %c0_i32_0 = arith.constant 0 : i32
    %c0_i32_1 = arith.constant 0 : i32
    %c0_i32_2 = arith.constant 0 : i32
    return %c0_i32, %c0_i32_0, %c0_i32_1 : i32, i32, i32
  }
  func.func @transform_7(%arg0: i32) -> (i32, i32, i32) {
    %c0_i32 = arith.constant 0 : i32
    %c0_i32_0 = arith.constant 0 : i32
    %c0_i32_1 = arith.constant 0 : i32
    %c0_i32_2 = arith.constant 0 : i32
    return %c0_i32, %c0_i32_0, %c0_i32_1 : i32, i32, i32
  }
  func.func @transform_8(%arg0: i32) -> (i32, i32, i32) {
    %c0_i32 = arith.constant 0 : i32
    %c0_i32_0 = arith.constant 0 : i32
    %c0_i32_1 = arith.constant 0 : i32
    %c0_i32_2 = arith.constant 0 : i32
    return %c0_i32, %c0_i32_0, %c0_i32_1 : i32, i32, i32
  }
  func.func @transform_9(%arg0: i32) -> (i32, i32) {
    %c0_i32 = arith.constant 0 : i32
    %c0_i32_0 = arith.constant 0 : i32
    %c0_i32_1 = arith.constant 0 : i32
    return %c0_i32, %c0_i32_0 : i32, i32
  }
  func.func @transform_10(%arg0: i32) -> (i32, i32) {
    %c0_i32 = arith.constant 0 : i32
    %c0_i32_0 = arith.constant 0 : i32
    %c0_i32_1 = arith.constant 0 : i32
    return %c0_i32, %c0_i32_0 : i32, i32
  }
  func.func @transform_11(%arg0: i32) -> (i32, i32) {
    %c0_i32 = arith.constant 0 : i32
    %c0_i32_0 = arith.constant 0 : i32
    %c0_i32_1 = arith.constant 0 : i32
    return %c0_i32, %c0_i32_0 : i32, i32
  }
  func.func @transform_12(%arg0: i32) -> (i32, i32) {
    %c0_i32 = arith.constant 0 : i32
    %c0_i32_0 = arith.constant 0 : i32
    %c0_i32_1 = arith.constant 0 : i32
    return %c0_i32, %c0_i32_0 : i32, i32
  }
  func.func @transform_13(%arg0: i32) -> (i32, i32) {
    %c0_i32 = arith.constant 0 : i32
    %c0_i32_0 = arith.constant 0 : i32
    %c0_i32_1 = arith.constant 0 : i32
    return %c0_i32, %c0_i32_0 : i32, i32
  }
  func.func @transform_14(%arg0: i32) -> (i32, i32) {
    %c0_i32 = arith.constant 0 : i32
    %c0_i32_0 = arith.constant 0 : i32
    %c0_i32_1 = arith.constant 0 : i32
    return %c0_i32, %c0_i32_0 : i32, i32
  }
  func.func @transform_15(%arg0: i32) -> (i32, i32) {
    %c0_i32 = arith.constant 0 : i32
    %c0_i32_0 = arith.constant 0 : i32
    %c0_i32_1 = arith.constant 0 : i32
    return %c0_i32, %c0_i32_0 : i32, i32
  }
  func.func @transform_16(%arg0: i32) -> (i32, i32) {
    %c0_i32 = arith.constant 0 : i32
    %c0_i32_0 = arith.constant 0 : i32
    %c0_i32_1 = arith.constant 0 : i32
    return %c0_i32, %c0_i32_0 : i32, i32
  }
  func.func @transform_17(%arg0: i32) -> (i32, i32) {
    %c0_i32 = arith.constant 0 : i32
    %c0_i32_0 = arith.constant 0 : i32
    %c0_i32_1 = arith.constant 0 : i32
    return %c0_i32, %c0_i32_0 : i32, i32
  }
  func.func @transform_18(%arg0: i32) -> (i32, i32, i32) {
    %c0_i32 = arith.constant 0 : i32
    %c0_i32_0 = arith.constant 0 : i32
    %c0_i32_1 = arith.constant 0 : i32
    return %arg0, %c0_i32, %c0_i32_0 : i32, i32, i32
  }
}

</mosaic_0001>

<bundles_post_ra>
// kernel: res_trsf_forward.2
= control target key start
LH: loop header
LB: loop body
LE: loop exit
PB: predicated region body
PF: predicated region fallthrough
CT: control target
= control target key end

     0   :  { %s709_s12 = smov 0   ;;  %s892_s0 = inlined_call_operand.vmem [shape: f32[2,256,27], index: 0, kind: input, shape index: {}]   ;;  %s893_s1 = inlined_call_operand.vmem [shape: bf16[27,16], index: 1, kind: input, shape index: {}]   ;;  %s894_s2 = inlined_call_operand.vmem [shape: f32[1,16], index: 2, kind: input, shape index: {}]   ;;  %s895_s3 = inlined_call_operand.vmem [shape: f32[2,256,16], index: 3, kind: output, shape index: {}]  }
   0x1 LB: > { %s579_s13 = sadd.s32 4294967295, %s686_s12   ;;  %p583_p0 = scmp.ge.s32.totalorder %s686_s12, 1  ;;  %s686_s12 = sphi %s709_s12, %s13_s12  }
   0x2   : > { %p137_p1 = scmp.lt.s32.totalorder %s686_s12, 3 }
   0x4   : > { %p138_p2 = pnand %p583_p0, %p137_p1 }
   0x5   : > { %p161_p3 = scmp.lt.s32.totalorder (!%p138_p2), %s579_s13, 1 }
   0x6   : > { %141 = sbr.rel (%p138_p2) target bundleno = 252 (0xfc), region = 32 }
   0xb   : > { %v678_v0 = vld [vmem:[%s893_s1 + $0x8] sm:$0x3f]   ;;  %vm291_vm0 = vcmask 1044480   ;;  %vm292_vm1 = vcmask 1045504   ;;  %v688_v1 = vmov 65535   ;;  %v679_v5 = vld [vmem:[%s893_s1] sm:$0xff]  }
   0xc   : > { %v293_v2 = vsel %vm291_vm0, 4294967295, %v688_v1  ;;  %s897_s13 = smov (!%p161_p3, %s579_s13), 1  ;;  %vm242_vm2 = vcmask 220160   ;;  %v784_v54 = vld [vmem:[%s894_s2] ss:$0 sm:$0xff]  ;;  %vm491_vm3 = vcmask 130048  }
   0xd   : > { %v294_v3 = vsel %vm292_vm1, %v293_v2, 0  ;;  %s609_s18 = sshll.u32 %s897_s13, 8 }
   0xe   : > { %v296_v4 = vand.u32 %v678_v0, %v294_v3  ;;  %s731_s21 = scalar_lea.vmem %s892_s0, %s609_s18  ;;  %s793_s26 = scalar_lea.vmem %s895_s3, %s609_s18 }
   0xf   : > { %v172_v6 = vld [vmem:[%s731_s21] sm:$0xff]  ;;  %v173_v7 = vld [vmem:[%s731_s21 + $0x8] sm:$0xff]  ;;  %v174_v11 = vld [vmem:[%s731_s21 + $0x10] sm:$0xff] }
  0x10   : > { %629 = vmatprep.subr.bf16.mxu0 %v296_v4  ;;  %665 = vmatprep.subr.bf16.mxu1 %v296_v4  ;;  %v188_v8 = vld [vmem:[%s731_s21 + $0x80] sm:$0xff]  ;;  %v204_v9 = vpack.c.bf16 %v173_v7, %v172_v6  ;;  %v189_v10 = vld [vmem:[%s731_s21 + $0x88] sm:$0xff]  ;;  %v175_v12 = vld [vmem:[%s731_s21 + $0x18] sm:$0xff] }
  0x11   : > { %630 = vmatpush3.bf16.msra.mxu0 %v296_v4  ;;  %667 = vmatpush3.bf16.msra.mxu1 %v296_v4  ;;  %v212_v13 = vpack.c.bf16 %v189_v10, %v188_v8  ;;  %v205_v14 = vpack.c.bf16 %v175_v12, %v174_v11  ;;  %v190_v15 = vld [vmem:[%s731_s21 + $0x90] sm:$0xff]  ;;  %v191_v16 = vld [vmem:[%s731_s21 + $0x98] sm:$0xff]  ;;  %v176_v17 = vld [vmem:[%s731_s21 + $0x20] sm:$0xff] }
  0x12   : > { %631 = vmatprep.subr.bf16.mxu0 %v679_v5  ;;  %666 = vmatprep.subr.bf16.mxu1 %v679_v5  ;;  %v213_v18 = vpack.c.bf16 %v191_v16, %v190_v15  ;;  %v177_v19 = vld [vmem:[%s731_s21 + $0x28] sm:$0xff]  ;;  %v192_v20 = vld [vmem:[%s731_s21 + $0xa0] sm:$0xff]  ;;  %v178_v24 = vld [vmem:[%s731_s21 + $0x30] sm:$0xff] }
  0x13   : > { %v193_v21 = vld [vmem:[%s731_s21 + $0xa8] sm:$0xff]  ;;  %633 = vmatprep.mubr.msk.bf16.mxu0 %vm242_vm2, %v204_v9  ;;  %649 = vmatprep.mubr.msk.bf16.mxu1 %vm242_vm2, %v212_v13  ;;  %v206_v22 = vpack.c.bf16 %v177_v19, %v176_v17  ;;  %v179_v25 = vld [vmem:[%s731_s21 + $0x38] sm:$0xff]  ;;  %v194_v26 = vld [vmem:[%s731_s21 + $0xb0] sm:$0xff] }
  0x14   : > { %v214_v23 = vpack.c.bf16 %v193_v21, %v192_v20  ;;  %v195_v27 = vld [vmem:[%s731_s21 + $0xb8] sm:$0xff]  ;;  %v180_v28 = vld [vmem:[%s731_s21 + $0x40] sm:$0xff]  ;;  %v181_v29 = vld [vmem:[%s731_s21 + $0x48] sm:$0xff]  ;;  %v207_v32 = vpack.c.bf16 %v179_v25, %v178_v24 }
  0x15   : > { %632 = vmatpush3.bf16.msra.mxu0 %v679_v5  ;;  %668 = vmatpush3.bf16.msra.mxu1 %v679_v5  ;;  %v196_v30 = vld [vmem:[%s731_s21 + $0xc0] sm:$0xff]  ;;  %v197_v31 = vld [vmem:[%s731_s21 + $0xc8] sm:$0xff]  ;;  %v215_v33 = vpack.c.bf16 %v195_v27, %v194_v26  ;;  %v208_v34 = vpack.c.bf16 %v181_v29, %v180_v28  ;;  %v182_v36 = vld [vmem:[%s731_s21 + $0x50] sm:$0xff] }
  0x16   : > { %v216_v35 = vpack.c.bf16 %v197_v31, %v196_v30  ;;  %v183_v37 = vld [vmem:[%s731_s21 + $0x58] sm:$0xff]  ;;  %v198_v38 = vld [vmem:[%s731_s21 + $0xd0] sm:$0xff]  ;;  %v184_v40 = vld [vmem:[%s731_s21 + $0x60] sm:$0xff] }
  0x17   : > { %v199_v39 = vld [vmem:[%s731_s21 + $0xd8] sm:$0xff]  ;;  %v185_v41 = vld [vmem:[%s731_s21 + $0x68] sm:$0xff]  ;;  %v200_v42 = vld [vmem:[%s731_s21 + $0xe0] sm:$0xff]  ;;  %v209_v44 = vpack.c.bf16 %v183_v37, %v182_v36 }
  0x18   : > { %634 = vmatmul.mubr.msk.bf16.vlgmr.msra.gmra.mxu0 %vm242_vm2, %v205_v14  ;;  %650 = vmatmul.mubr.msk.bf16.vlgmr.msra.gmra.mxu1 %vm242_vm2, %v213_v18  ;;  %v201_v43 = vld [vmem:[%s731_s21 + $0xe8] sm:$0xff]  ;;  %v217_v45 = vpack.c.bf16 %v199_v39, %v198_v38  ;;  %v210_v46 = vpack.c.bf16 %v185_v41, %v184_v40  ;;  %v186_v48 = vld [vmem:[%s731_s21 + $0x70] sm:$0xff]  ;;  %v187_v49 = vld [vmem:[%s731_s21 + $0x78] sm:$0xff] }
  0x19   : > { %637 = vmatprep.mubr.msk.bf16.mxu0 %vm242_vm2, %v206_v22  ;;  %653 = vmatprep.mubr.msk.bf16.mxu1 %vm242_vm2, %v214_v23  ;;  %v218_v47 = vpack.c.bf16 %v201_v43, %v200_v42  ;;  %v202_v50 = vld [vmem:[%s731_s21 + $0xf0] sm:$0xff]  ;;  %v203_v51 = vld [vmem:[%s731_s21 + $0xf8] sm:$0xff]  ;;  %v211_v52 = vpack.c.bf16 %v187_v49, %v186_v48 }
  0x1a   : > { %v219_v53 = vpack.c.bf16 %v203_v51, %v202_v50 }
  0x20   : > { %638 = vmatmul.mubr.msk.bf16.gmra.mxu0 %vm242_vm2, %v207_v32  ;;  %654 = vmatmul.mubr.msk.bf16.gmra.mxu1 %vm242_vm2, %v215_v33 }
  0x21   : > { %641 = vmatprep.mubr.msk.bf16.mxu0 %vm242_vm2, %v208_v34  ;;  %657 = vmatprep.mubr.msk.bf16.mxu1 %vm242_vm2, %v216_v35 }
  0x28   : > { %642 = vmatmul.mubr.msk.bf16.gmra.mxu0 %vm242_vm2, %v209_v44  ;;  %658 = vmatmul.mubr.msk.bf16.gmra.mxu1 %vm242_vm2, %v217_v45 }
  0x29   : > { %645 = vmatprep.mubr.msk.bf16.mxu0 %vm242_vm2, %v210_v46  ;;  %661 = vmatprep.mubr.msk.bf16.mxu1 %vm242_vm2, %v218_v47 }
  0x30   : > { %646 = vmatmul.mubr.msk.bf16.gmra.mxu0 %vm242_vm2, %v211_v52  ;;  %662 = vmatmul.mubr.msk.bf16.gmra.mxu1 %vm242_vm2, %v219_v53 }
  0xd8   : > { %v635_v55 = vpop.f32.mrf.mxu0  ;;  %v651_v56 = vpop.f32.mrf.mxu1 }
  0xd9   : > { %v341_v57 = vadd.f32 %v635_v55, %v784_v54  ;;  %v405_v58 = vadd.f32 %v651_v56, %v784_v54 }
  0xda   : > { %v332_v59 = vpop.f32.mrf.mxu0  ;;  %v396_v60 = vpop.f32.mrf.mxu1 }
  0xdb   : > { %v461_v61 = vmax.f32 %v341_v57, 0.0  ;;  %v477_v62 = vmax.f32 %v405_v58, 0.0  ;;  %v333_v63 = vadd.f32 %v784_v54, %v332_v59  ;;  %v397_v0 = vadd.f32 %v784_v54, %v396_v60 }
  0xdc   : > { %v636_v1 = vpop.f32.mrf.mxu0  ;;  %v652_v2 = vpop.f32.mrf.mxu1 }
  0xdd   : > { %494 = vst.msk [vmem:[%s793_s26 + $0x10] sm:$0xff] %vm491_vm3, %v461_v61  ;;  %510 = vst.msk [vmem:[%s793_s26 + $0x90] sm:$0xff] %vm491_vm3, %v477_v62  ;;  %v459_v3 = vmax.f32 %v333_v63, 0.0  ;;  %v475_v4 = vmax.f32 %v397_v0, 0.0  ;;  %v344_v5 = vadd.f32 %v636_v1, %v784_v54  ;;  %v408_v6 = vadd.f32 %v652_v2, %v784_v54 }
  0xde   : > { %v335_v7 = vpop.f32.mrf.mxu0  ;;  %v399_v8 = vpop.f32.mrf.mxu1 }
  0xdf   : > { %492 = vst.msk [vmem:[%s793_s26] sm:$0xff] %vm491_vm3, %v459_v3  ;;  %508 = vst.msk [vmem:[%s793_s26 + $0x80] sm:$0xff] %vm491_vm3, %v475_v4  ;;  %v462_v9 = vmax.f32 %v344_v5, 0.0  ;;  %v478_v10 = vmax.f32 %v408_v6, 0.0  ;;  %v336_v11 = vadd.f32 %v784_v54, %v335_v7  ;;  %v400_v12 = vadd.f32 %v784_v54, %v399_v8 }
  0xe0   : > { %v639_v13 = vpop.f32.mrf.mxu0  ;;  %v655_v14 = vpop.f32.mrf.mxu1 }
  0xe1   : > { %495 = vst.msk [vmem:[%s793_s26 + $0x18] sm:$0xff] %vm491_vm3, %v462_v9  ;;  %511 = vst.msk [vmem:[%s793_s26 + $0x98] sm:$0xff] %vm491_vm3, %v478_v10  ;;  %v460_v15 = vmax.f32 %v336_v11, 0.0  ;;  %v476_v16 = vmax.f32 %v400_v12, 0.0  ;;  %v357_v17 = vadd.f32 %v639_v13, %v784_v54  ;;  %v421_v18 = vadd.f32 %v655_v14, %v784_v54 }
  0xe2   : > { %v348_v19 = vpop.f32.mrf.mxu0  ;;  %v412_v20 = vpop.f32.mrf.mxu1 }
  0xe3   : > { %493 = vst.msk [vmem:[%s793_s26 + $0x8] sm:$0xff] %vm491_vm3, %v460_v15  ;;  %509 = vst.msk [vmem:[%s793_s26 + $0x88] sm:$0xff] %vm491_vm3, %v476_v16  ;;  %v465_v21 = vmax.f32 %v357_v17, 0.0  ;;  %v481_v22 = vmax.f32 %v421_v18, 0.0  ;;  %v349_v23 = vadd.f32 %v784_v54, %v348_v19  ;;  %v413_v24 = vadd.f32 %v784_v54, %v412_v20 }
  0xe4   : > { %v640_v25 = vpop.f32.mrf.mxu0  ;;  %v656_v26 = vpop.f32.mrf.mxu1 }
  0xe5   : > { %498 = vst.msk [vmem:[%s793_s26 + $0x30] sm:$0xff] %vm491_vm3, %v465_v21  ;;  %514 = vst.msk [vmem:[%s793_s26 + $0xb0] sm:$0xff] %vm491_vm3, %v481_v22  ;;  %v463_v27 = vmax.f32 %v349_v23, 0.0  ;;  %v479_v28 = vmax.f32 %v413_v24, 0.0  ;;  %v360_v29 = vadd.f32 %v640_v25, %v784_v54  ;;  %v424_v30 = vadd.f32 %v656_v26, %v784_v54 }
  0xe6   : > { %v351_v31 = vpop.f32.mrf.mxu0  ;;  %v415_v32 = vpop.f32.mrf.mxu1 }
  0xe7   : > { %496 = vst.msk [vmem:[%s793_s26 + $0x20] sm:$0xff] %vm491_vm3, %v463_v27  ;;  %512 = vst.msk [vmem:[%s793_s26 + $0xa0] sm:$0xff] %vm491_vm3, %v479_v28  ;;  %v466_v33 = vmax.f32 %v360_v29, 0.0  ;;  %v482_v34 = vmax.f32 %v424_v30, 0.0  ;;  %v352_v35 = vadd.f32 %v784_v54, %v351_v31  ;;  %v416_v36 = vadd.f32 %v784_v54, %v415_v32 }
  0xe8   : > { %v643_v37 = vpop.f32.mrf.mxu0  ;;  %v659_v38 = vpop.f32.mrf.mxu1 }
  0xe9   : > { %499 = vst.msk [vmem:[%s793_s26 + $0x38] sm:$0xff] %vm491_vm3, %v466_v33  ;;  %515 = vst.msk [vmem:[%s793_s26 + $0xb8] sm:$0xff] %vm491_vm3, %v482_v34  ;;  %v464_v39 = vmax.f32 %v352_v35, 0.0  ;;  %v480_v40 = vmax.f32 %v416_v36, 0.0  ;;  %v373_v41 = vadd.f32 %v643_v37, %v784_v54  ;;  %v437_v42 = vadd.f32 %v659_v38, %v784_v54 }
  0xea   : > { %v364_v43 = vpop.f32.mrf.mxu0  ;;  %v428_v44 = vpop.f32.mrf.mxu1 }
  0xeb   : > { %497 = vst.msk [vmem:[%s793_s26 + $0x28] sm:$0xff] %vm491_vm3, %v464_v39  ;;  %513 = vst.msk [vmem:[%s793_s26 + $0xa8] sm:$0xff] %vm491_vm3, %v480_v40  ;;  %v469_v45 = vmax.f32 %v373_v41, 0.0  ;;  %v485_v46 = vmax.f32 %v437_v42, 0.0  ;;  %v365_v47 = vadd.f32 %v784_v54, %v364_v43  ;;  %v429_v48 = vadd.f32 %v784_v54, %v428_v44 }
  0xec   : > { %v644_v49 = vpop.f32.mrf.mxu0  ;;  %v660_v50 = vpop.f32.mrf.mxu1 }
  0xed   : > { %502 = vst.msk [vmem:[%s793_s26 + $0x50] sm:$0xff] %vm491_vm3, %v469_v45  ;;  %518 = vst.msk [vmem:[%s793_s26 + $0xd0] sm:$0xff] %vm491_vm3, %v485_v46  ;;  %v467_v51 = vmax.f32 %v365_v47, 0.0  ;;  %v483_v52 = vmax.f32 %v429_v48, 0.0  ;;  %v376_v53 = vadd.f32 %v644_v49, %v784_v54  ;;  %v440_v55 = vadd.f32 %v660_v50, %v784_v54 }
  0xee   : > { %v367_v56 = vpop.f32.mrf.mxu0  ;;  %v431_v57 = vpop.f32.mrf.mxu1 }
  0xef   : > { %500 = vst.msk [vmem:[%s793_s26 + $0x40] sm:$0xff] %vm491_vm3, %v467_v51  ;;  %516 = vst.msk [vmem:[%s793_s26 + $0xc0] sm:$0xff] %vm491_vm3, %v483_v52  ;;  %v470_v58 = vmax.f32 %v376_v53, 0.0  ;;  %v486_v59 = vmax.f32 %v440_v55, 0.0  ;;  %v368_v60 = vadd.f32 %v784_v54, %v367_v56  ;;  %v432_v61 = vadd.f32 %v784_v54, %v431_v57 }
  0xf0   : > { %v647_v62 = vpop.f32.mrf.mxu0  ;;  %v663_v63 = vpop.f32.mrf.mxu1 }
  0xf1   : > { %503 = vst.msk [vmem:[%s793_s26 + $0x58] sm:$0xff] %vm491_vm3, %v470_v58  ;;  %519 = vst.msk [vmem:[%s793_s26 + $0xd8] sm:$0xff] %vm491_vm3, %v486_v59  ;;  %v468_v0 = vmax.f32 %v368_v60, 0.0  ;;  %v484_v1 = vmax.f32 %v432_v61, 0.0  ;;  %v389_v2 = vadd.f32 %v647_v62, %v784_v54  ;;  %v453_v3 = vadd.f32 %v663_v63, %v784_v54 }
  0xf2   : > { %v380_v4 = vpop.f32.mrf.mxu0  ;;  %v444_v5 = vpop.f32.mrf.mxu1 }
  0xf3   : > { %501 = vst.msk [vmem:[%s793_s26 + $0x48] sm:$0xff] %vm491_vm3, %v468_v0  ;;  %517 = vst.msk [vmem:[%s793_s26 + $0xc8] sm:$0xff] %vm491_vm3, %v484_v1  ;;  %v473_v6 = vmax.f32 %v389_v2, 0.0  ;;  %v489_v7 = vmax.f32 %v453_v3, 0.0  ;;  %v381_v8 = vadd.f32 %v784_v54, %v380_v4  ;;  %v445_v9 = vadd.f32 %v784_v54, %v444_v5 }
  0xf4   : > { %v648_v10 = vpop.f32.mrf.mxu0  ;;  %v664_v11 = vpop.f32.mrf.mxu1 }
  0xf5   : > { %506 = vst.msk [vmem:[%s793_s26 + $0x70] sm:$0xff] %vm491_vm3, %v473_v6  ;;  %522 = vst.msk [vmem:[%s793_s26 + $0xf0] sm:$0xff] %vm491_vm3, %v489_v7  ;;  %v471_v12 = vmax.f32 %v381_v8, 0.0  ;;  %v487_v13 = vmax.f32 %v445_v9, 0.0  ;;  %v392_v14 = vadd.f32 %v648_v10, %v784_v54  ;;  %v456_v15 = vadd.f32 %v664_v11, %v784_v54 }
  0xf6   : > { %v383_v16 = vpop.f32.mrf.mxu0  ;;  %v447_v17 = vpop.f32.mrf.mxu1 }
  0xf7   : > { %504 = vst.msk [vmem:[%s793_s26 + $0x60] sm:$0xff] %vm491_vm3, %v471_v12  ;;  %520 = vst.msk [vmem:[%s793_s26 + $0xe0] sm:$0xff] %vm491_vm3, %v487_v13  ;;  %v474_v18 = vmax.f32 %v392_v14, 0.0  ;;  %v490_v19 = vmax.f32 %v456_v15, 0.0  ;;  %v384_v20 = vadd.f32 %v784_v54, %v383_v16  ;;  %v448_v21 = vadd.f32 %v784_v54, %v447_v17 }
  0xf9   : > { %507 = vst.msk [vmem:[%s793_s26 + $0x78] sm:$0xff] %vm491_vm3, %v474_v18  ;;  %523 = vst.msk [vmem:[%s793_s26 + $0xf8] sm:$0xff] %vm491_vm3, %v490_v19  ;;  %v472_v22 = vmax.f32 %v384_v20, 0.0  ;;  %v488_v23 = vmax.f32 %v448_v21, 0.0 }
  0xfb   : > { %505 = vst.msk [vmem:[%s793_s26 + $0x68] sm:$0xff] %vm491_vm3, %v472_v22  ;;  %521 = vst.msk [vmem:[%s793_s26 + $0xe8] sm:$0xff] %vm491_vm3, %v488_v23 }
  0xfc PF: > { %s13_s12 = sadd.s32 1, %s686_s12  }
  0xfd   : > { %p10_p4 = scmp.ge.s32.totalorder %s13_s12, 4  }
  0xff   :  { %12 = sbr.rel (!%p10_p4) target bundleno = 1 (0x1), region = 62 }

// kernel: res_trsf_forward.3
= control target key start
LH: loop header
LB: loop body
LE: loop exit
PB: predicated region body
PF: predicated region fallthrough
CT: control target
= control target key end

     0   :  { %s4390_s0 = inlined_call_operand.vmem [shape: f32[2,64,144], index: 0, kind: input, shape index: {}]   ;;  %s4391_s1 = inlined_call_operand.vmem [shape: bf16[144,24], index: 1, kind: input, shape index: {}]   ;;  %s4392_s2 = inlined_call_operand.vmem [shape: f32[1,24], index: 2, kind: input, shape index: {}]   ;;  %s4393_s3 = inlined_call_operand.vmem [shape: f32[64,24], index: 3, kind: input, shape index: {}]   ;;  %s4394_s4 = inlined_call_operand.vmem [shape: f32[1,24], index: 4, kind: input, shape index: {}]   ;;  %s4395_s5 = inlined_call_operand.vmem [shape: f32[1,24], index: 5, kind: input, shape index: {}]   ;;  %s4396_s6 = inlined_call_operand.vmem [shape: bf16[6,24,12], index: 6, kind: input, shape index: {}]   ;;  %s4397_s7 = inlined_call_operand.vmem [shape: f32[6,1,12], index: 7, kind: input, shape index: {}]   ;;  %s4398_s8 = inlined_call_operand.vmem [shape: bf16[2,12,24], index: 8, kind: input, shape index: {}]   ;;  %s4399_s9 = inlined_call_operand.vmem [shape: f32[1,24], index: 9, kind: input, shape index: {}]   ;;  %s4400_s10 = inlined_call_operand.vmem [shape: f32[1,24], index: 10, kind: input, shape index: {}]   ;;  %s4401_s11 = inlined_call_operand.vmem [shape: f32[1,24], index: 11, kind: input, shape index: {}]   ;;  %s4402_s12 = inlined_call_operand.vmem [shape: bf16[24,96], index: 12, kind: input, shape index: {}]   ;;  %s4403_s13 = inlined_call_operand.vmem [shape: f32[1,96], index: 13, kind: input, shape index: {}]   ;;  %s4404_s14 = inlined_call_operand.vmem [shape: bf16[96,24], index: 14, kind: input, shape index: {}]   ;;  %s4405_s15 = inlined_call_operand.vmem [shape: f32[1,24], index: 15, kind: input, shape index: {}]   ;;  %s4406_s16 = inlined_call_operand.vmem [shape: bf16[24,128], index: 16, kind: input, shape index: {}]   ;;  %s4407_s17 = inlined_call_operand.vmem [shape: f32[1,128], index: 17, kind: input, shape index: {}]   ;;  %s4408_s18 = inlined_call_operand.hbm [shape: f32[2,1,128], index: 18, kind: output, shape index: {}]  }
   0x1   :  { %4415 = sst [smem:[#allocation10_spill]] %s4390_s0 }
   0x2   :  { %4416 = sst [smem:[#allocation11_spill]] %s4391_s1 }
   0x3   :  { %4417 = sst [smem:[#allocation12_spill]] %s4392_s2 }
   0x4   :  { %4418 = sst [smem:[#allocation13_spill]] %s4393_s3 }
   0x5   :  { %23 = vsyncpa [#allocation3], 0 }
   0x6   :  { %25 = vsyncpa [#allocation3 + $0x1], 0  ;;  %s3633_s27 = smov 0   ;;  %s3635_s28 = smov 0  }
   0x7   :  { %s3637_s29 = smov 0   ;;  %s3639_s30 = smov 0  }
   0x8 LB: > { %4419 = sst [smem:[#allocation5_spill]] %s3520_s27  ;;  %s3654_s0 = sadd.s32 4294967295, %s3532_s30   ;;  %s3532_s30 = sphi %s3639_s30, %s4432_s30   ;;  %s3528_s29 = sphi %s3637_s29, %s4434_s29   ;;  %s3524_s28 = sphi %s3635_s28, %s4436_s28   ;;  %s3520_s27 = sphi %s3633_s27, %s4435_s27  }
   0x9   : > { %4420 = sst [smem:[#allocation6_spill]] %s3528_s29  ;;  %s2835_s19 = sadd.s32 4294967294, %s3532_s30  }
   0xa   : > { %s3658_s1 = sadd.s32 1, %s3532_s30   ;;  %s421_s20 = sadd.s32 1, %s3528_s29 }
   0xb   : > { %4421 = sst [smem:[#allocation7_spill]] %s3658_s1  ;;  %s418_s21 = ssub.s32 %s3532_s30, %s3658_s1 }
   0xc   : > { %p431_p0 = scmp.ne.s32.totalorder %s3528_s29, %s3524_s28  ;;  %p419_p1 = scmp.eq.s32.totalorder %s418_s21, 0 }
   0xd   : > { %p432_p2 = scmp.eq.s32.totalorder %s3654_s0, 1  ;;  %p437_p3 = scmp.ne.s32.totalorder %s3524_s28, %s3520_s27 }
   0xe   : > { %p438_p4 = scmp.eq.s32.totalorder %s2835_s19, 1  ;;  %p2838_p7 = scmp.ge.s32.totalorder %s3532_s30, 1 }
   0xf   : > { %s3669_s22 = scalar_select %p419_p1, %s3528_s29, %s421_s20  }
  0x10   : > { %p3671_p5 = por %p432_p2, %p431_p0  ;;  %p3675_p6 = por %p438_p4, %p437_p3 }
  0x11   : > { %4422 = sst [smem:[#allocation8_spill]] %s3669_s22  ;;  %p515_p8 = scmp.lt.s32.totalorder %s3532_s30, 3 }
  0x12   : > { %s4424_s23 = scalar_select %p3675_p6, 1, 0 }
  0x13   : > { %p516_p9 = pnand %p2838_p7, %p515_p8 }
  0x14   : > { %4425 = sst [smem:[#allocation9_spill]] %s4424_s23  ;;  %p568_p10 = scmp.lt.s32.totalorder (!%p516_p9), %s3654_s0, 1 }
  0x15   : > { %519 = sbr.rel (%p516_p9) target bundleno = 3507 (0xdb3), region = 92  ;;  %s4426_s26 = sld [smem:[#allocation11_spill]] (!%p516_p9) }
  0x16   : > { %s4427_s23 = sld [smem:[#allocation10_spill]] (!%p516_p9)  ;;  %s2971_s25 = sshll.u32 (!%p516_p9), %s3654_s0, 4 }
  0x17   : > { %s4429_s3 = sld [smem:[#allocation13_spill]] (!%p516_p9) }
  0x1a   : > { %v3534_v1 = vmov 0   ;;  %s569_s21 = scalar_select %p568_p10, %s3654_s0, 1  ;;  %vm677_vm0 = vcmask 130048   ;;  %vm781_vm1 = vcmask 195584   ;;  %vm950_vm2 = vcmask 1043456  }
  0x1b   : > { %v3327_v0 = vld [vmem:[%s4426_s26 + $0x38] sm:$0xff]   ;;  %690 = vmatprep.subr.bf16.mxu0 %v3534_v1  ;;  %v3328_v2 = vld [vmem:[%s4426_s26 + $0x30] sm:$0xff]   ;;  %v3329_v3 = vld [vmem:[%s4426_s26 + $0x28] sm:$0xff]   ;;  %vm1205_vm3 = vcmask 97280   ;;  %vm1303_vm4 = vcmask 523264   ;;  %vm2052_vm5 = vcmask 1045504  }
  0x1c   : > { %691 = vmatpush1.bf16.msra.mxu0 %v3327_v0  ;;  %s2974_s22 = sshll.u32 %s569_s21, 7  ;;  %v3330_v6 = vld [vmem:[%s4426_s26 + $0x20] sm:$0xff]   ;;  %v3331_v8 = vld [vmem:[%s4426_s26 + $0x18] sm:$0xff]   ;;  %v3332_v9 = vld [vmem:[%s4426_s26 + $0x10] sm:$0xff]   ;;  %vm2597_vm6 = vcmask 785408   ;;  %vm3536_vm7 = vmmov 0  }
  0x1d   : > { %692 = vmatprep.subr.bf16.mxu0 %v3534_v1  ;;  %s3695_s27 = scalar_lea.vmem %s4427_s23, %s2974_s22  ;;  %v3333_v10 = vld [vmem:[%s4426_s26 + $0x8] sm:$0xff]   ;;  %v3334_v11 = vld [vmem:[%s4426_s26] sm:$0xff]   ;;  %s4428_s23 = sld [smem:[#allocation12_spill]]  ;;  %v765_v50 = vld [vmem:[%s4429_s3 + $0x10] sm:$0xff] }
  0x1e   : > { %v575_v4 = vld [vmem:[%s3695_s27 + $0x8] sm:$0xff]  ;;  %v577_v5 = vld [vmem:[%s3695_s27 + $0x18] sm:$0xff]  ;;  %v3335_v12 = vld [vmem:[%s4426_s26 + $0x40] sm:$0xff]   ;;  %s566_s21 = sand.u32 1, %s3524_s28   ;;  %s4349_s22 = scalar_lea.hbm %s4408_s18, %s2971_s25 }
  0x1f   : > { %v591_v7 = vpack.c.bf16 %v577_v5, %v575_v4  ;;  %v574_v13 = vld [vmem:[%s3695_s27] sm:$0xff]  ;;  %v576_v14 = vld [vmem:[%s3695_s27 + $0x10] sm:$0xff]  ;;  %v579_v15 = vld [vmem:[%s3695_s27 + $0x28] sm:$0xff]  ;;  %s567_s19 = scalar_lea.vmem [#allocation2], %s566_s21  ;;  %s3537_s0 = smov [#allocation2]  }
  0x20   : > { %693 = vmatpush1.bf16.msra.mxu0 %v3328_v2  ;;  %v581_v16 = vld [vmem:[%s3695_s27 + $0x38] sm:$0xff]  ;;  %v590_v17 = vpack.c.bf16 %v576_v14, %v574_v13  ;;  %v578_v19 = vld [vmem:[%s3695_s27 + $0x20] sm:$0xff]  ;;  %v580_v20 = vld [vmem:[%s3695_s27 + $0x30] sm:$0xff]  ;;  %s2780_s20 = sshll.u32 %s567_s19, 4  ;;  %s4351_s20 = int_to_ptr.vmem [resolvable:$true] %s2780_s20 }
  0x21   : > { %694 = vmatprep.subr.bf16.mxu0 %v3534_v1  ;;  %2851 = vmatprep.mubr.msk.bf16.mxu0 %vm677_vm0, %v591_v7  ;;  %v593_v18 = vpack.c.bf16 %v581_v16, %v579_v15  ;;  %v583_v21 = vld [vmem:[%s3695_s27 + $0x48] sm:$0xff]  ;;  %v585_v22 = vld [vmem:[%s3695_s27 + $0x58] sm:$0xff]  ;;  %v592_v23 = vpack.c.bf16 %v580_v20, %v578_v19  ;;  %v582_v25 = vld [vmem:[%s3695_s27 + $0x40] sm:$0xff]  ;;  %s3472_s24 = scalar_lea.vmem %s4351_s20, 16 }
  0x22   : > { %v595_v24 = vpack.c.bf16 %v585_v22, %v583_v21  ;;  %v584_v26 = vld [vmem:[%s3695_s27 + $0x50] sm:$0xff]  ;;  %v587_v27 = vld [vmem:[%s3695_s27 + $0x68] sm:$0xff]  ;;  %v589_v28 = vld [vmem:[%s3695_s27 + $0x78] sm:$0xff]  ;;  %p3473_p11 = scmp.ne.s32.totalorder %s4351_s20, %s3472_s24 }
  0x23   : > { %v594_v29 = vpack.c.bf16 %v584_v26, %v582_v25  ;;  %v597_v30 = vpack.c.bf16 %v589_v28, %v587_v27  ;;  %v586_v31 = vld [vmem:[%s3695_s27 + $0x60] sm:$0xff]  ;;  %v588_v32 = vld [vmem:[%s3695_s27 + $0x70] sm:$0xff]  ;;  %v764_v43 = vld [vmem:[%s4429_s3 + $0x8] sm:$0xff]  ;;  %s3476_s27 = sshll.u32 %s3537_s0, 4  ;;  %s3477_s27 = int_to_ptr.vmem [resolvable:$false] %s3476_s27 }
  0x24   : > { %695 = vmatpush1.bf16.msra.mxu0 %v3329_v3  ;;  %v596_v33 = vpack.c.bf16 %v588_v32, %v586_v31  ;;  %v2841_v34 = vld [vmem:[%s4428_s23] ss:$0 sm:$0xff]  ;;  %v766_v57 = vld [vmem:[%s4429_s3 + $0x18] sm:$0xff]  ;;  %v768_v7 = vld [vmem:[%s4429_s3 + $0x28] sm:$0xff]  ;;  %s2768_s23 = scalar_lea.sflag [#allocation3], %s566_s21  ;;  %p3474_p12 = pnand %p3473_p11, %p3671_p5 }
  0x25   : > { %696 = vmatprep.subr.bf16.mxu0 %v3534_v1  ;;  %v763_v37 = vld [vmem:[%s4429_s3] sm:$0xff]  ;;  %v769_v14 = vld [vmem:[%s4429_s3 + $0x30] sm:$0xff]  ;;  %v770_v21 = vld [vmem:[%s4429_s3 + $0x38] sm:$0xff]  ;;  %s3478_s29 = scalar_lea.vmem %s3477_s27, 32  ;;  %p3479_p0 = scmp.lt.s32.totalorder %s4351_s20, %s3477_s27 }
  0x26   : > { %v767_v0 = vld [vmem:[%s4429_s3 + $0x20] sm:$0xff]  ;;  %p3475_p13 = pneg %p3474_p12  ;;  %p3480_p1 = scmp.lt.s32.totalorder %s3478_s29, %s3472_s24 }
  0x28   : > { %697 = vmatpush1.bf16.msra.mxu0 %v3330_v6  ;;  %p3481_p2 = por %p3480_p1, %p3479_p0 }
  0x29   : > { %698 = vmatprep.subr.bf16.mxu0 %v3534_v1 }
  0x2a   : > { %p3482_p3 = pnand %p3481_p2, %p3475_p13 }
  0x2c   : > { %699 = vmatpush1.bf16.msra.mxu0 %v3331_v8 }
  0x2d   : > { %700 = vmatprep.subr.bf16.mxu0 %v3534_v1 }
  0x30   : > { %701 = vmatpush1.bf16.msra.mxu0 %v3332_v9 }
  0x31   : > { %702 = vmatprep.subr.bf16.mxu0 %v3534_v1 }
  0x34   : > { %703 = vmatpush1.bf16.msra.mxu0 %v3333_v10 }
  0x35   : > { %704 = vmatprep.subr.bf16.mxu0 %v3534_v1 }
  0x38   : > { %705 = vmatpush1.bf16.msra.mxu0 %v3334_v11 }
  0x39   : > { %720 = vmatprep.subr.bf16.mxu0 %v3534_v1 }
  0x3c   : > { %721 = vmatpush2.bf16.msra.mxu0 %v3335_v12 }
  0x3f   : > { %723 = vmatmul.mubr.bf16.vlgmr.msra.gmra.mxu0 %v590_v17 }
  0x40   : > { %2852 = vmatprep.mubr.msk.bf16.mxu0 %vm677_vm0, %v593_v18 }
  0x47   : > { %731 = vmatmul.mubr.bf16.gmra.mxu0 %v592_v23 }
  0x48   : > { %2853 = vmatprep.mubr.msk.bf16.mxu0 %vm677_vm0, %v595_v24 }
  0x4f   : > { %739 = vmatmul.mubr.bf16.gmra.mxu0 %v594_v29 }
  0x50   : > { %2854 = vmatprep.mubr.msk.bf16.mxu0 %vm677_vm0, %v597_v30 }
  0x57   : > { %747 = vmatmul.mubr.bf16.gmra.mxu0 %v596_v33 }
  0xff   : > { %v724_v35 = vpop.f32.mrf.mxu0 }
 0x100   : > { %v725_v36 = vadd.f32 %v2841_v34, %v724_v35 }
 0x101   : > { %v726_v38 = vpop.f32.mrf.mxu0 }
 0x102   : > { %v755_v39 = vmax.f32 %v725_v36, 0.0 }
 0x103   : > { %v727_v40 = vpop.f32.mrf.mxu0 }
 0x104   : > { %v3741_v41 = vadd.f32 %v763_v37, %v755_v39  ;;  %v728_v42 = vadd.f32 %v2841_v34, %v727_v40 }
 0x105   : > { %v729_v44 = vpop.f32.mrf.mxu0 }
 0x106   : > { %v756_v45 = vmax.f32 %v728_v42, 0.0  ;;  %v782_v46 = vsel %vm781_vm1, %v3741_v41, 0.0 }
 0x107   : > { %v732_v47 = vpop.f32.mrf.mxu0  ;;  %783 = vadd.xlane.f32.xlu0 %v782_v46 }
 0x108   : > { %v3748_v48 = vadd.f32 %v764_v43, %v756_v45  ;;  %v733_v49 = vadd.f32 %v2841_v34, %v732_v47 }
 0x109   : > { %v734_v51 = vpop.f32.mrf.mxu0 }
 0x10a   : > { %v757_v52 = vmax.f32 %v733_v49, 0.0  ;;  %v785_v53 = vsel %vm781_vm1, %v3748_v48, 0.0 }
 0x10b   : > { %v735_v54 = vpop.f32.mrf.mxu0  ;;  %786 = vadd.xlane.f32.xlu0 %v785_v53 }
 0x10c   : > { %v3755_v55 = vadd.f32 %v765_v50, %v757_v52  ;;  %v736_v56 = vadd.f32 %v2841_v34, %v735_v54 }
 0x10d   : > { %v737_v58 = vpop.f32.mrf.mxu0 }
 0x10e   : > { %v758_v59 = vmax.f32 %v736_v56, 0.0  ;;  %v788_v60 = vsel %vm781_vm1, %v3755_v55, 0.0 }
 0x10f   : > { %v740_v61 = vpop.f32.mrf.mxu0  ;;  %789 = vadd.xlane.f32.xlu1 %v788_v60 }
 0x110   : > { %v3762_v62 = vadd.f32 %v766_v57, %v758_v59  ;;  %v741_v63 = vadd.f32 %v2841_v34, %v740_v61 }
 0x111   : > { %v742_v1 = vpop.f32.mrf.mxu0 }
 0x112   : > { %v759_v2 = vmax.f32 %v741_v63, 0.0  ;;  %v791_v3 = vsel %vm781_vm1, %v3762_v62, 0.0 }
 0x113   : > { %v743_v4 = vpop.f32.mrf.mxu0  ;;  %792 = vadd.xlane.f32.xlu1 %v791_v3 }
 0x114   : > { %v3769_v5 = vadd.f32 %v767_v0, %v759_v2  ;;  %v744_v6 = vadd.f32 %v2841_v34, %v743_v4 }
 0x115   : > { %v745_v8 = vpop.f32.mrf.mxu0 }
 0x116   : > { %v760_v9 = vmax.f32 %v744_v6, 0.0  ;;  %v794_v10 = vsel %vm781_vm1, %v3769_v5, 0.0  ;;  %v3336_v8 = vld [vmem:[%s4396_s6 + $0x8] ss:$0 sps:$4 sm:$0xff]  }
 0x117   : > { %v748_v11 = vpop.f32.mrf.mxu0  ;;  %795 = vadd.xlane.f32.xlu0 %v794_v10  ;;  %3268 = vmatprep.subr.msk.bf16.mxu1 %vm950_vm2, %v3336_v8  ;;  %v3337_v10 = vld [vmem:[%s4396_s6] sm:$0xff]  }
 0x118   : > { %v3776_v12 = vadd.f32 %v768_v7, %v760_v9  ;;  %v749_v13 = vadd.f32 %v2841_v34, %v748_v11  ;;  %v952_v9 = vsel %vm950_vm2, %v3336_v8, 0  ;;  %v3338_v11 = vld [vmem:[%s4396_s6 + $0x20] ss:$0 sps:$4 sm:$0xff]   ;;  %v3339_v8 = vld [vmem:[%s4396_s6 + $0x18] sm:$0xff]  }
 0x119   : > { %v750_v15 = vpop.f32.mrf.mxu0  ;;  %3073 = vmatpush3.bf16.msra.mxu1 %v952_v9 }
 0x11a   : > { %v761_v16 = vmax.f32 %v749_v13, 0.0  ;;  %v797_v17 = vsel %vm781_vm1, %v3776_v12, 0.0  ;;  %3074 = vmatprep.subr.bf16.mxu1 %v3337_v10 }
 0x11b   : > { %v751_v18 = vpop.f32.mrf.mxu0  ;;  %798 = vadd.xlane.f32.xlu1 %v797_v17 }
 0x11c   : > { %v3783_v19 = vadd.f32 %v769_v14, %v761_v16  ;;  %v752_v20 = vadd.f32 %v2841_v34, %v751_v18 }
 0x11d   : > { %v753_v22 = vpop.f32.mrf.mxu0  ;;  %3075 = vmatpush3.bf16.msra.mxu1 %v3337_v10 }
 0x11e   : > { %v762_v23 = vmax.f32 %v752_v20, 0.0  ;;  %v800_v24 = vsel %vm781_vm1, %v3783_v19, 0.0  ;;  %3269 = vmatprep.subr.msk.bf16.mxu1 %vm950_vm2, %v3338_v11 }
 0x11f   : > { %801 = vadd.xlane.f32.xlu0 %v800_v24 }
 0x120   : > { %v3790_v25 = vadd.f32 %v770_v21, %v762_v23 }
 0x122   : > { %v803_v26 = vsel %vm781_vm1, %v3790_v25, 0.0 }
 0x123   : > { %804 = vadd.xlane.f32.xlu1 %v803_v26 }
 0x190   : > { %v784_v27 = vpop.xlane.xlu0 %783 }
 0x191   : > { %v807_v28 = vmul.f32 0.041666668, %v784_v27 }
 0x193   : > { %v3795_v29 = vsub.f32 %v3741_v41, %v807_v28 }
 0x194   : > { %v787_v30 = vpop.xlane.xlu0 %786 }
 0x195   : > { %v808_v31 = vmul.f32 0.041666668, %v787_v30  ;;  %v823_v32 = vmul.f32 %v3795_v29, %v3795_v29 }
 0x197   : > { %v3800_v33 = vsub.f32 %v3748_v48, %v808_v31  ;;  %v831_v34 = vsel %vm781_vm1, %v823_v32, 0.0 }
 0x198   : > { %v790_v35 = vpop.xlane.xlu1 %789  ;;  %832 = vadd.xlane.f32.xlu0 %v831_v34  ;;  %v2855_v34 = vld [vmem:[%s4394_s4] ss:$0 sm:$0xff] }
 0x199   : > { %v809_v36 = vmul.f32 0.041666668, %v790_v35  ;;  %v824_v37 = vmul.f32 %v3800_v33, %v3800_v33 }
 0x19b   : > { %v3806_v38 = vsub.f32 %v3755_v55, %v809_v36  ;;  %v834_v39 = vsel %vm781_vm1, %v824_v37, 0.0 }
 0x19c   : > { %v793_v40 = vpop.xlane.xlu1 %792  ;;  %835 = vadd.xlane.f32.xlu1 %v834_v39 }
 0x19d   : > { %v810_v42 = vmul.f32 0.041666668, %v793_v40  ;;  %v825_v43 = vmul.f32 %v3806_v38, %v3806_v38 }
 0x19f   : > { %v3812_v44 = vsub.f32 %v3762_v62, %v810_v42  ;;  %v837_v45 = vsel %vm781_vm1, %v825_v43, 0.0 }
 0x1a0   : > { %838 = vadd.xlane.f32.xlu0 %v837_v45  ;;  %v796_v46 = vpop.xlane.xlu0 %795  ;;  %v2856_v45 = vld [vmem:[%s4395_s5] ss:$0 sm:$0xff] }
 0x1a1   : > { %v811_v47 = vmul.f32 0.041666668, %v796_v46  ;;  %v826_v49 = vmul.f32 %v3812_v44, %v3812_v44 }
 0x1a3   : > { %v3818_v50 = vsub.f32 %v3769_v5, %v811_v47  ;;  %v840_v51 = vsel %vm781_vm1, %v826_v49, 0.0 }
 0x1a4   : > { %v799_v52 = vpop.xlane.xlu1 %798  ;;  %841 = vadd.xlane.f32.xlu1 %v840_v51 }
 0x1a5   : > { %v812_v53 = vmul.f32 0.041666668, %v799_v52  ;;  %v827_v54 = vmul.f32 %v3818_v50, %v3818_v50 }
 0x1a7   : > { %v3824_v56 = vsub.f32 %v3776_v12, %v812_v53  ;;  %v843_v57 = vsel %vm781_vm1, %v827_v54, 0.0 }
 0x1a8   : > { %844 = vadd.xlane.f32.xlu0 %v843_v57  ;;  %v802_v58 = vpop.xlane.xlu0 %801 }
 0x1a9   : > { %v813_v59 = vmul.f32 0.041666668, %v802_v58  ;;  %v828_v60 = vmul.f32 %v3824_v56, %v3824_v56 }
 0x1ab   : > { %v3830_v61 = vsub.f32 %v3783_v19, %v813_v59  ;;  %v846_v63 = vsel %vm781_vm1, %v828_v60, 0.0 }
 0x1ac   : > { %v805_v0 = vpop.xlane.xlu1 %804  ;;  %847 = vadd.xlane.f32.xlu1 %v846_v63 }
 0x1ad   : > { %v814_v1 = vmul.f32 0.041666668, %v805_v0  ;;  %v829_v2 = vmul.f32 %v3830_v61, %v3830_v61 }
 0x1af   : > { %v3836_v3 = vsub.f32 %v3790_v25, %v814_v1  ;;  %v849_v4 = vsel %vm781_vm1, %v829_v2, 0.0 }
 0x1b0   : > { %850 = vadd.xlane.f32.xlu0 %v849_v4 }
 0x1b1   : > { %v830_v6 = vmul.f32 %v3836_v3, %v3836_v3 }
 0x1b3   : > { %v852_v7 = vsel %vm781_vm1, %v830_v6, 0.0 }
 0x1b4   : > { %853 = vadd.xlane.f32.xlu1 %v852_v7  ;;  %v1041_v7 = vsel %vm950_vm2, %v3338_v11, 0 }
 0x221   : > { %v833_v13 = vpop.xlane.xlu0 %832 }
 0x222   : > { %v855_v14 = vmul.f32 0.041666668, %v833_v13 }
 0x224   : > { %v863_v15 = vadd.f32 1e-05, %v855_v14 }
 0x225   : > { %v836_v16 = vpop.xlane.xlu1 %835 }
 0x226   : > { %3360 = vrsqrt.f32 %v863_v15  ;;  %v856_v17 = vmul.f32 0.041666668, %v836_v16 }
 0x228   : > { %v864_v18 = vadd.f32 1e-05, %v856_v17 }
 0x229   : > { %v839_v20 = vpop.xlane.xlu0 %838 }
 0x22a   : > { %3362 = vrsqrt.f32 %v864_v18  ;;  %v857_v21 = vmul.f32 0.041666668, %v839_v20 }
 0x22c   : > { %v865_v22 = vadd.f32 1e-05, %v857_v21 }
 0x22d   : > { %v842_v23 = vpop.xlane.xlu1 %841 }
 0x22e   : > { %3364 = vrsqrt.f32 %v865_v22  ;;  %v858_v24 = vmul.f32 0.041666668, %v842_v23 }
 0x230   : > { %v866_v26 = vadd.f32 1e-05, %v858_v24 }
 0x231   : > { %v845_v27 = vpop.xlane.xlu0 %844 }
 0x232   : > { %3366 = vrsqrt.f32 %v866_v26  ;;  %v859_v28 = vmul.f32 0.041666668, %v845_v27  ;;  %v3915_v27 = vld [vmem:[%s4397_s7] ss:$0 sm:$0xff] }
 0x233   : > { %v3361_v30 = vpop.eup %3360 }
 0x234   : > { %v879_v31 = vmul.f32 %v3361_v30, %v3795_v29  ;;  %v867_v32 = vadd.f32 1e-05, %v859_v28 }
 0x235   : > { %v848_v35 = vpop.xlane.xlu1 %847 }
 0x236   : > { %3368 = vrsqrt.f32 %v867_v32  ;;  %v860_v36 = vmul.f32 0.041666668, %v848_v35  ;;  %v893_v39 = vmul.f32 %v2855_v34, %v879_v31 }
 0x237   : > { %v3363_v37 = vpop.eup %3362 }
 0x238   : > { %v880_v40 = vmul.f32 %v3363_v37, %v3800_v33  ;;  %v868_v42 = vadd.f32 1e-05, %v860_v36  ;;  %v907_v52 = vadd.f32 %v2856_v45, %v893_v39 }
 0x239   : > { %v851_v43 = vpop.xlane.xlu0 %850 }
 0x23a   : > { %v894_v46 = vmul.f32 %v2855_v34, %v880_v40  ;;  %3370 = vrsqrt.f32 %v868_v42  ;;  %v861_v29 = vmul.f32 0.041666668, %v851_v43 }
 0x23b   : > { %v3365_v47 = vpop.eup %3364 }
 0x23c   : > { %v881_v49 = vmul.f32 %v3365_v47, %v3806_v38  ;;  %v869_v51 = vadd.f32 1e-05, %v861_v29  ;;  %v908_v53 = vadd.f32 %v2856_v45, %v894_v46 }
 0x23d   : > { %v854_v54 = vpop.xlane.xlu1 %853 }
 0x23e   : > { %3372 = vrsqrt.f32 %v869_v51  ;;  %v862_v57 = vmul.f32 0.041666668, %v854_v54  ;;  %v3863_v58 = vpack.c.bf16 %v908_v53, %v907_v52  ;;  %v895_v59 = vmul.f32 %v2855_v34, %v881_v49  ;;  %v2868_v53 = vld [vmem:[%s4397_s7 + $0x2] ss:$0 sm:$0xff] }
 0x23f   : > { %v3367_v33 = vpop.eup %3366 }
 0x240   : > { %v882_v60 = vmul.f32 %v3367_v33, %v3812_v44  ;;  %v870_v63 = vadd.f32 1e-05, %v862_v57  ;;  %3076 = vmatprep.mubr.msk.bf16.mxu1 %vm781_vm1, %v3863_v58  ;;  %v909_v2 = vadd.f32 %v2856_v45, %v895_v59 }
 0x242   : > { %v896_v0 = vmul.f32 %v2855_v34, %v882_v60  ;;  %3374 = vrsqrt.f32 %v870_v63 }
 0x243   : > { %v3369_v1 = vpop.eup %3368 }
 0x244   : > { %v883_v38 = vmul.f32 %v3369_v1, %v3818_v50  ;;  %v910_v4 = vadd.f32 %v2856_v45, %v896_v0  ;;  %v3340_v50 = vld [vmem:[%s4396_s6 + $0x38] ss:$0 sps:$4 sm:$0xff]  }
 0x246   : > { %v3869_v6 = vpack.c.bf16 %v910_v4, %v909_v2  ;;  %v897_v9 = vmul.f32 %v2855_v34, %v883_v38 }
 0x247   : > { %v3371_v44 = vpop.eup %3370 }
 0x248   : > { %v884_v10 = vmul.f32 %v3371_v44, %v3824_v56  ;;  %3077 = vmatmul.mubr.msk.bf16.vlgmr.msra.gmra.mxu1 %vm781_vm1, %v3869_v6  ;;  %v911_v15 = vadd.f32 %v2856_v45, %v897_v9 }
 0x249   : > { %3085 = vmatpush3.bf16.msra.mxu1 %v1041_v7 }
 0x24a   : > { %v898_v13 = vmul.f32 %v2855_v34, %v884_v10  ;;  %3086 = vmatprep.subr.bf16.mxu1 %v3339_v8 }
 0x24b   : > { %v3373_v14 = vpop.eup %3372 }
 0x24c   : > { %v885_v11 = vmul.f32 %v3373_v14, %v3830_v61  ;;  %v912_v16 = vadd.f32 %v2856_v45, %v898_v13  ;;  %v1130_v61 = vsel %vm950_vm2, %v3340_v50, 0 }
 0x24d   : > { %3087 = vmatpush3.bf16.msra.mxu1 %v3339_v8 }
 0x24e   : > { %v3882_v17 = vpack.c.bf16 %v912_v16, %v911_v15  ;;  %3270 = vmatprep.subr.msk.bf16.mxu1 %vm950_vm2, %v3340_v50  ;;  %v899_v18 = vmul.f32 %v2855_v34, %v885_v11  ;;  %v2879_v11 = vld [vmem:[%s4397_s7 + $0x4] ss:$0 sm:$0xff] }
 0x24f   : > { %v3375_v56 = vpop.eup %3374 }
 0x250   : > { %v886_v20 = vmul.f32 %v3375_v56, %v3836_v3  ;;  %3080 = vmatprep.mubr.msk.bf16.mxu1 %vm781_vm1, %v3882_v17  ;;  %v913_v22 = vadd.f32 %v2856_v45, %v899_v18  ;;  %v3341_v3 = vld [vmem:[%s4396_s6 + $0x30] sm:$0xff]  }
 0x252   : > { %v900_v21 = vmul.f32 %v2855_v34, %v886_v20 }
 0x254   : > { %v914_v23 = vadd.f32 %v2856_v45, %v900_v21 }
 0x256   : > { %v3888_v24 = vpack.c.bf16 %v914_v23, %v913_v22 }
 0x258   : > { %3081 = vmatmul.mubr.msk.bf16.gmra.mxu1 %vm781_vm1, %v3888_v24 }
 0x259   : > { %3088 = vmatprep.mubr.msk.bf16.mxu1 %vm781_vm1, %v3863_v58 }
 0x260   : > { %3089 = vmatmul.mubr.msk.bf16.vlgmr.msra.gmra.mxu1 %vm781_vm1, %v3869_v6 }
 0x261   : > { %3092 = vmatprep.mubr.msk.bf16.mxu1 %vm781_vm1, %v3882_v17  ;;  %3097 = vmatpush3.bf16.msra.mxu1 %v1130_v61 }
 0x262   : > { %3098 = vmatprep.subr.bf16.mxu1 %v3341_v3 }
 0x265   : > { %3099 = vmatpush3.bf16.msra.mxu1 %v3341_v3 }
 0x268   : > { %3093 = vmatmul.mubr.msk.bf16.gmra.mxu1 %vm781_vm1, %v3888_v24 }
 0x269   : > { %3100 = vmatprep.mubr.msk.bf16.mxu1 %vm781_vm1, %v3863_v58 }
 0x270   : > { %3101 = vmatmul.mubr.msk.bf16.vlgmr.msra.gmra.mxu1 %vm781_vm1, %v3869_v6 }
 0x271   : > { %3104 = vmatprep.mubr.msk.bf16.mxu1 %vm781_vm1, %v3882_v17 }
 0x278   : > { %3105 = vmatmul.mubr.msk.bf16.gmra.mxu1 %vm781_vm1, %v3888_v24 }
 0x308   : > { %v3078_v26 = vpop.f32.mrf.mxu1 }
 0x309   : > { %v3918_v31 = vadd.f32 %v3078_v26, %v3915_v27 }
 0x30a   : > { %v988_v28 = vpop.f32.mrf.mxu1 }
 0x30b   : > { %v989_v35 = vadd.f32 %v3915_v27, %v988_v28 }
 0x30c   : > { %v3079_v30 = vpop.f32.mrf.mxu1 }
 0x30d   : > { %v3921_v32 = vadd.f32 %v3079_v30, %v3915_v27 }
 0x30e   : > { %v991_v34 = vpop.f32.mrf.mxu1 }
 0x30f   : > { %v1198_v36 = vpack.c.bf16 %v3921_v32, %v3918_v31  ;;  %v992_v37 = vadd.f32 %v3915_v27, %v991_v34 }
 0x311   : > { %v1197_v39 = vpack.c.bf16 %v992_v37, %v989_v35 }
 0x313   : > { %3116 = vmatprep.mubr.msk.bf16.mxu0 %vm1205_vm3, %v1197_v39 }
 0x318   : > { %v3928_v40 = vpop.f32.mrf.mxu1 }
 0x31a   : > { %v3930_v42 = vpop.f32.mrf.mxu1 }
 0x31c   : > { %v3932_v43 = vpop.f32.mrf.mxu1 }
 0x31e   : > { %v3934_v45 = vpop.f32.mrf.mxu1 }
 0x320   : > { %v3090_v46 = vpop.f32.mrf.mxu1 }
 0x321   : > { %v1086_v9 = vadd.f32 %v3090_v46, %v2868_v53  ;;  %v3342_v46 = vld [vmem:[%s4396_s6 + $0x2c] ss:$0 sps:$4 sm:$0xff]  }
 0x322   : > { %v1077_v29 = vpop.f32.mrf.mxu1 }
 0x323   : > { %v1078_v21 = vadd.f32 %v2868_v53, %v1077_v29 }
 0x324   : > { %v3091_v47 = vpop.f32.mrf.mxu1 }
 0x325   : > { %v1089_v8 = vadd.f32 %v3091_v47, %v2868_v53 }
 0x326   : > { %v1080_v49 = vpop.f32.mrf.mxu1 }
 0x327   : > { %v1202_v13 = vpack.c.bf16 %v1089_v8, %v1086_v9  ;;  %v1081_v16 = vadd.f32 %v2868_v53, %v1080_v49  ;;  %v1008_v49 = vadd.f32 %v3915_v27, %v3934_v45  ;;  %v1016_v45 = vadd.f32 %v3932_v43, %v3915_v27 }
 0x328   : > { %v3094_v51 = vpop.f32.mrf.mxu1 }
 0x329   : > { %v1102_v57 = vadd.f32 %v3094_v51, %v2868_v53  ;;  %v1201_v3 = vpack.c.bf16 %v1081_v16, %v1078_v21  ;;  %v1222_v30 = vsel %vm1205_vm3, %v1202_v13, 0  ;;  %v1005_v51 = vadd.f32 %v3915_v27, %v3930_v42 }
 0x32a   : > { %v1093_v52 = vpop.f32.mrf.mxu1  ;;  %v1013_v42 = vadd.f32 %v3928_v40, %v3915_v27 }
 0x32b   : > { %v1094_v60 = vadd.f32 %v2868_v53, %v1093_v52  ;;  %v1219_v47 = vsel %vm1205_vm3, %v1201_v3, 0  ;;  %v1594_v52 = vsel %vm950_vm2, %v3342_v46, 0 }
 0x32c   : > { %v3095_v54 = vpop.f32.mrf.mxu1 }
 0x32d   : > { %v1105_v33 = vadd.f32 %v3095_v54, %v2868_v53  ;;  %v1199_v54 = vpack.c.bf16 %v1008_v49, %v1005_v51 }
 0x32e   : > { %v1096_v59 = vpop.f32.mrf.mxu1 }
 0x32f   : > { %v1204_v63 = vpack.c.bf16 %v1105_v33, %v1102_v57  ;;  %v1097_v0 = vadd.f32 %v2868_v53, %v1096_v59  ;;  %v3343_v53 = vld [vmem:[%s4396_s6 + $0x24] sm:$0xff]   ;;  %v1200_v57 = vpack.c.bf16 %v1016_v45, %v1013_v42 }
 0x330   : > { %v3102_v1 = vpop.f32.mrf.mxu1 }
 0x331   : > { %v1203_v38 = vpack.c.bf16 %v1097_v0, %v1094_v60  ;;  %3271 = vmatprep.subr.msk.bf16.mxu0 %vm1205_vm3, %v1204_v63  ;;  %v1228_v2 = vsel %vm1205_vm3, %v1204_v63, 0  ;;  %v1175_v34 = vadd.f32 %v3102_v1, %v2879_v11 }
 0x332   : > { %v1166_v4 = vpop.f32.mrf.mxu1  ;;  %3109 = vmatpush3.bf16.xpose.msra.mxu0 %v1228_v2 }
 0x333   : > { %3272 = vmatprep.subr.msk.bf16.mxu0 %vm1205_vm3, %v1203_v38  ;;  %v1225_v50 = vsel %vm1205_vm3, %v1203_v38, 0  ;;  %v1167_v39 = vadd.f32 %v2879_v11, %v1166_v4 }
 0x334   : > { %v3103_v7 = vpop.f32.mrf.mxu1 }
 0x335   : > { %v1178_v26 = vadd.f32 %v3103_v7, %v2879_v11 }
 0x336   : > { %v1169_v44 = vpop.f32.mrf.mxu1 }
 0x337   : > { %v1397_v35 = vpack.c.bf16 %v1178_v26, %v1175_v34  ;;  %v1170_v37 = vadd.f32 %v2879_v11, %v1169_v44 }
 0x338   : > { %v3106_v10 = vpop.f32.mrf.mxu1 }
 0x339   : > { %v1191_v56 = vadd.f32 %v3106_v10, %v2879_v11  ;;  %v1396_v29 = vpack.c.bf16 %v1170_v37, %v1167_v39 }
 0x33a   : > { %v1182_v14 = vpop.f32.mrf.mxu1  ;;  %3111 = vmatpush3.bf16.xpose.msra.mxu0 %v1225_v50 }
 0x33b   : > { %3273 = vmatprep.subr.msk.bf16.mxu0 %vm1205_vm3, %v1202_v13  ;;  %v1183_v22 = vadd.f32 %v2879_v11, %v1182_v14 }
 0x33c   : > { %v3107_v15 = vpop.f32.mrf.mxu1 }
 0x33d   : > { %v1194_v18 = vadd.f32 %v3107_v15, %v2879_v11 }
 0x33e   : > { %v1185_v20 = vpop.f32.mrf.mxu1 }
 0x33f   : > { %v1399_v23 = vpack.c.bf16 %v1194_v18, %v1191_v56  ;;  %v1186_v61 = vadd.f32 %v2879_v11, %v1185_v20 }
 0x341   : > { %v1398_v28 = vpack.c.bf16 %v1186_v61, %v1183_v22  ;;  %3124 = vmatprep.subr.bf16.mxu1 %v1399_v23  ;;  %v2909_v22 = vld [vmem:[%s4397_s7 + $0x3] ss:$0 sm:$0xff] }
 0x342   : > { %3113 = vmatpush3.bf16.xpose.msra.mxu0 %v1222_v30  ;;  %3125 = vmatpush3.bf16.msra.mxu1 %v1399_v23 }
 0x343   : > { %3274 = vmatprep.subr.msk.bf16.mxu0 %vm1205_vm3, %v1201_v3  ;;  %3126 = vmatprep.subr.bf16.mxu1 %v1398_v28 }
 0x346   : > { %3127 = vmatpush3.bf16.msra.mxu1 %v1398_v28 }
 0x347   : > { %3128 = vmatprep.subr.bf16.mxu1 %v1397_v35 }
 0x34a   : > { %3115 = vmatpush3.bf16.xpose.msra.mxu0 %v1219_v47  ;;  %3129 = vmatpush3.bf16.msra.mxu1 %v1397_v35 }
 0x34b   : > { %3130 = vmatprep.subr.bf16.mxu1 %v1396_v29  ;;  %3276 = vmatprep.subr.msk.bf16.mxu0 %vm950_vm2, %v3342_v46 }
 0x34e   : > { %3131 = vmatpush3.bf16.msra.mxu1 %v1396_v29 }
 0x351   : > { %3117 = vmatmul.mubr.msk.bf16.vlgmr.msra.gmra.mxu0 %vm1205_vm3, %v1198_v36 }
 0x352   : > { %3120 = vmatprep.mubr.msk.bf16.mxu0 %vm1205_vm3, %v1199_v54  ;;  %3153 = vmatpush3.bf16.msra.mxu0 %v1594_v52 }
 0x353   : > { %3154 = vmatprep.subr.bf16.mxu0 %v3343_v53 }
 0x356   : > { %3155 = vmatpush3.bf16.msra.mxu0 %v3343_v53 }
 0x359   : > { %3121 = vmatmul.mubr.msk.bf16.gmra.mxu0 %vm1205_vm3, %v1200_v57 }
 0x35a   : > { %3156 = vmatprep.mubr.msk.bf16.mxu0 %vm781_vm1, %v3863_v58 }
 0x361   : > { %3157 = vmatmul.mubr.msk.bf16.vlgmr.msra.gmra.mxu0 %vm781_vm1, %v3869_v6 }
 0x362   : > { %3160 = vmatprep.mubr.msk.bf16.mxu0 %vm781_vm1, %v3882_v17 }
 0x369   : > { %3161 = vmatmul.mubr.msk.bf16.gmra.mxu0 %vm781_vm1, %v3888_v24 }
 0x411   : > { %v3118_v31 = vpop.f32.mrf.mxu0 }
 0x412   : > { %v3982_v40 = vmul.f32 0.28867513, %v3118_v31 }
 0x413   : > { %v1264_v32 = vpop.f32.mrf.mxu0 }
 0x414   : > { %v3980_v36 = vmul.f32 0.28867513, %v1264_v32  ;;  %v1310_v0 = vsel %vm1303_vm4, %v3982_v40, -inf }
 0x415   : > { %v3119_v27 = vpop.f32.mrf.mxu0 }
 0x416   : > { %v1304_v43 = vsel %vm1303_vm4, %v3980_v36, -inf  ;;  %v3988_v63 = vmul.f32 0.28867513, %v3119_v27 }
 0x417   : > { %1305 = vmax.xlane.f32.xlu0 %v1304_v43  ;;  %v1267_v33 = vpop.f32.mrf.mxu0 }
 0x418   : > { %v3986_v59 = vmul.f32 0.28867513, %v1267_v33  ;;  %v1313_v8 = vsel %vm1303_vm4, %v3988_v63, -inf }
 0x419   : > { %v3122_v60 = vpop.f32.mrf.mxu0 }
 0x41a   : > { %v1307_v1 = vsel %vm1303_vm4, %v3986_v59, -inf  ;;  %v3996_v7 = vmul.f32 0.28867513, %v3122_v60 }
 0x41b   : > { %1311 = vmax.xlane.f32.xlu0 %v1310_v0  ;;  %1308 = vmax.xlane.f32.xlu1 %v1307_v1  ;;  %v1280_v38 = vpop.f32.mrf.mxu0 }
 0x41c   : > { %v3994_v2 = vmul.f32 0.28867513, %v1280_v38  ;;  %v1322_v14 = vsel %vm1303_vm4, %v3996_v7, -inf }
 0x41d   : > { %v3123_v4 = vpop.f32.mrf.mxu0 }
 0x41e   : > { %v1316_v44 = vsel %vm1303_vm4, %v3994_v2, -inf  ;;  %v4004_v50 = vmul.f32 0.28867513, %v3123_v4 }
 0x41f   : > { %1314 = vmax.xlane.f32.xlu1 %v1313_v8  ;;  %1317 = vmax.xlane.f32.xlu0 %v1316_v44  ;;  %v1283_v9 = vpop.f32.mrf.mxu0 }
 0x420   : > { %v4002_v10 = vmul.f32 0.28867513, %v1283_v9  ;;  %v1325_v56 = vsel %vm1303_vm4, %v4004_v50, -inf }
 0x421   : > { %v3158_v13 = vpop.f32.mrf.mxu0 }
 0x422   : > { %v1319_v11 = vsel %vm1303_vm4, %v4002_v10, -inf  ;;  %v1639_v46 = vadd.f32 %v3158_v13, %v2909_v22 }
 0x423   : > { %1323 = vmax.xlane.f32.xlu0 %v1322_v14  ;;  %v1630_v15 = vpop.f32.mrf.mxu0  ;;  %1320 = vmax.xlane.f32.xlu1 %v1319_v11 }
 0x424   : > { %v1631_v51 = vadd.f32 %v2909_v22, %v1630_v15 }
 0x425   : > { %v3159_v16 = vpop.f32.mrf.mxu0 }
 0x426   : > { %v1642_v39 = vadd.f32 %v3159_v16, %v2909_v22 }
 0x427   : > { %v1633_v18 = vpop.f32.mrf.mxu0  ;;  %1326 = vmax.xlane.f32.xlu1 %v1325_v56 }
 0x428   : > { %v1755_v29 = vpack.c.bf16 %v1642_v39, %v1639_v46  ;;  %v1634_v49 = vadd.f32 %v2909_v22, %v1633_v18 }
 0x429   : > { %v3162_v20 = vpop.f32.mrf.mxu0 }
 0x42a   : > { %v1655_v61 = vadd.f32 %v3162_v20, %v2909_v22  ;;  %v1754_v52 = vpack.c.bf16 %v1634_v49, %v1631_v51  ;;  %v1774_v53 = vsel %vm1205_vm3, %v1755_v29, 0 }
 0x42b   : > { %v1646_v21 = vpop.f32.mrf.mxu0 }
 0x42c   : > { %v1647_v28 = vadd.f32 %v2909_v22, %v1646_v21  ;;  %v1771_v54 = vsel %vm1205_vm3, %v1754_v52, 0 }
 0x42d   : > { %v3163_v23 = vpop.f32.mrf.mxu0 }
 0x42e   : > { %v1658_v3 = vadd.f32 %v3163_v23, %v2909_v22 }
 0x42f   : > { %v1649_v26 = vpop.f32.mrf.mxu0 }
 0x430   : > { %v1757_v30 = vpack.c.bf16 %v1658_v3, %v1655_v61  ;;  %v1650_v34 = vadd.f32 %v2909_v22, %v1649_v26 }
 0x432   : > { %v1756_v35 = vpack.c.bf16 %v1650_v34, %v1647_v28  ;;  %3278 = vmatprep.subr.msk.bf16.mxu0 %vm1205_vm3, %v1757_v30  ;;  %v1780_v37 = vsel %vm1205_vm3, %v1757_v30, 0  ;;  %v3344_v34 = vld [vmem:[%s4396_s6 + $0x14] ss:$0 sps:$4 sm:$0xff]  }
 0x433   : > { %3177 = vmatpush3.bf16.xpose.msra.mxu0 %v1780_v37  ;;  %3275 = vmatprep.subr.msk.bf16.mxu1 %vm950_vm2, %v3344_v34 }
 0x434   : > { %3279 = vmatprep.subr.msk.bf16.mxu0 %vm1205_vm3, %v1756_v35  ;;  %v1777_v47 = vsel %vm1205_vm3, %v1756_v35, 0 }
 0x43b   : > { %3179 = vmatpush3.bf16.xpose.msra.mxu0 %v1777_v47 }
 0x43c   : > { %3280 = vmatprep.subr.msk.bf16.mxu0 %vm1205_vm3, %v1755_v29 }
 0x443   : > { %3181 = vmatpush3.bf16.xpose.msra.mxu0 %v1774_v53 }
 0x444   : > { %3281 = vmatprep.subr.msk.bf16.mxu0 %vm1205_vm3, %v1754_v52 }
 0x44b   : > { %3183 = vmatpush3.bf16.xpose.msra.mxu0 %v1771_v54 }
 0x4a0   : > { %v1306_v45 = vpop.xlane.xlu0 %1305 }
 0x4a1   : > { %v1328_v42 = vsub.f32 %v3980_v36, %v1306_v45 }
 0x4a3   : > { %v1336_v57 = vmul.f32 1.442695, %v1328_v42 }
 0x4a4   : > { %v1312_v31 = vpop.xlane.xlu0 %1311  ;;  %v1309_v32 = vpop.xlane.xlu1 %1308 }
 0x4a5   : > { %3376 = vpow2.f32 %v1336_v57  ;;  %v1330_v27 = vsub.f32 %v3982_v40, %v1312_v31  ;;  %v1329_v43 = vsub.f32 %v3986_v59, %v1309_v32 }
 0x4a7   : > { %v1340_v33 = vmul.f32 1.442695, %v1330_v27  ;;  %v1338_v60 = vmul.f32 1.442695, %v1329_v43 }
 0x4a8   : > { %v1315_v0 = vpop.xlane.xlu1 %1314  ;;  %v1318_v1 = vpop.xlane.xlu0 %1317 }
 0x4a9   : > { %3378 = vpow2.f32 %v1340_v33  ;;  %v1331_v38 = vsub.f32 %v3988_v63, %v1315_v0  ;;  %v1332_v4 = vsub.f32 %v3994_v2, %v1318_v1  ;;  %v3345_v0 = vld [vmem:[%s4396_s6 + $0xc] sm:$0xff]  }
 0x4aa   : > { %3380 = vpow2.f32 %v1338_v60  ;;  %v1505_v60 = vsel %vm950_vm2, %v3344_v34, 0 }
 0x4ab   : > { %v1342_v8 = vmul.f32 1.442695, %v1331_v38  ;;  %v1344_v36 = vmul.f32 1.442695, %v1332_v4 }
 0x4ac   : > { %v1324_v44 = vpop.xlane.xlu0 %1323  ;;  %v1321_v9 = vpop.xlane.xlu1 %1320 }
 0x4ad   : > { %3382 = vpow2.f32 %v1342_v8  ;;  %v1334_v13 = vsub.f32 %v3996_v7, %v1324_v44  ;;  %v1333_v40 = vsub.f32 %v4002_v10, %v1321_v9  ;;  %v3346_v9 = vld [vmem:[%s4396_s6 + $0x44] ss:$0 sps:$4 sm:$0xff]  }
 0x4ae   : > { %3384 = vpow2.f32 %v1344_v36 }
 0x4af   : > { %v1348_v59 = vmul.f32 1.442695, %v1334_v13  ;;  %v1346_v14 = vmul.f32 1.442695, %v1333_v40 }
 0x4b0   : > { %v1327_v11 = vpop.xlane.xlu1 %1326 }
 0x4b1   : > { %3386 = vpow2.f32 %v1348_v59  ;;  %v1335_v15 = vsub.f32 %v4004_v50, %v1327_v11  ;;  %v3347_v11 = vld [vmem:[%s4396_s6 + $0x3c] sm:$0xff]  }
 0x4b2   : > { %v3377_v63 = vpop.eup %3376  ;;  %3388 = vpow2.f32 %v1346_v14  ;;  %v1683_v14 = vsel %vm950_vm2, %v3346_v9, 0 }
 0x4b3   : > { %v1350_v2 = vmul.f32 1.442695, %v1335_v15  ;;  %v1352_v16 = vsel %vm1303_vm4, %v3377_v63, 0.0  ;;  %v3348_v15 = vld [vmem:[%s4398_s8] sm:$0x3f]  }
 0x4b4   : > { %1353 = vadd.xlane.f32.xlu0 %v1352_v16  ;;  %3283 = vmatprep.subr.msk.bf16.mxu0 %vm2052_vm5, %v3348_v15  ;;  %v2139_v34 = vsel %vm2052_vm5, %v3348_v15, 0 }
 0x4b5   : > { %3390 = vpow2.f32 %v1350_v2 }
 0x4b6   : > { %v3379_v56 = vpop.eup %3378 }
 0x4b7   : > { %v3381_v18 = vpop.eup %3380  ;;  %v1358_v7 = vsel %vm1303_vm4, %v3379_v56, 0.0 }
 0x4b8   : > { %1359 = vadd.xlane.f32.xlu0 %v1358_v7  ;;  %v1355_v10 = vsel %vm1303_vm4, %v3381_v18, 0.0 }
 0x4b9   : > { %1356 = vadd.xlane.f32.xlu1 %v1355_v10 }
 0x4ba   : > { %v3383_v20 = vpop.eup %3382 }
 0x4bb   : > { %v3385_v21 = vpop.eup %3384  ;;  %v1361_v22 = vsel %vm1303_vm4, %v3383_v20, 0.0 }
 0x4bc   : > { %v1364_v50 = vsel %vm1303_vm4, %v3385_v21, 0.0 }
 0x4bd   : > { %1365 = vadd.xlane.f32.xlu0 %v1364_v50  ;;  %1362 = vadd.xlane.f32.xlu1 %v1361_v22 }
 0x4be   : > { %v3387_v23 = vpop.eup %3386 }
 0x4bf   : > { %v3389_v61 = vpop.eup %3388  ;;  %v1370_v3 = vsel %vm1303_vm4, %v3387_v23, 0.0 }
 0x4c0   : > { %v1367_v26 = vsel %vm1303_vm4, %v3389_v61, 0.0 }
 0x4c1   : > { %1371 = vadd.xlane.f32.xlu0 %v1370_v3  ;;  %1368 = vadd.xlane.f32.xlu1 %v1367_v26 }
 0x4c2   : > { %v3391_v28 = vpop.eup %3390 }
 0x4c3   : > { %v1373_v30 = vsel %vm1303_vm4, %v3391_v28, 0.0 }
 0x4c5   : > { %1374 = vadd.xlane.f32.xlu1 %v1373_v30 }
 0x53d   : > { %v1354_v35 = vpop.xlane.xlu0 %1353 }
 0x53e   : > { %3392 = vrcp.f32 %v1354_v35 }
 0x541   : > { %v1360_v37 = vpop.xlane.xlu0 %1359 }
 0x542   : > { %v1357_v39 = vpop.xlane.xlu1 %1356 }
 0x543   : > { %3394 = vrcp.f32 %v1357_v39 }
 0x544   : > { %3396 = vrcp.f32 %v1360_v37 }
 0x546   : > { %v1366_v46 = vpop.xlane.xlu0 %1365  ;;  %v1363_v29 = vpop.xlane.xlu1 %1362 }
 0x547   : > { %3398 = vrcp.f32 %v1363_v29 }
 0x548   : > { %3400 = vrcp.f32 %v1366_v46 }
 0x54a   : > { %v1372_v47 = vpop.xlane.xlu0 %1371  ;;  %v1369_v49 = vpop.xlane.xlu1 %1368 }
 0x54b   : > { %3402 = vrcp.f32 %v1369_v49  ;;  %v3393_v51 = vpop.eup %3392 }
 0x54c   : > { %3404 = vrcp.f32 %v1372_v47  ;;  %v1377_v54 = vmul.f32 %v3393_v51, %v3377_v63 }
 0x54e   : > { %v1375_v52 = vpop.xlane.xlu1 %1374 }
 0x54f   : > { %3406 = vrcp.f32 %v1375_v52 }
 0x550   : > { %v3395_v53 = vpop.eup %3394 }
 0x551   : > { %v1379_v45 = vmul.f32 %v3395_v53, %v3381_v18  ;;  %v3397_v42 = vpop.eup %3396 }
 0x552   : > { %v1381_v32 = vmul.f32 %v3397_v42, %v3379_v56 }
 0x553   : > { %v1392_v57 = vpack.c.bf16 %v1379_v45, %v1377_v54 }
 0x554   : > { %v3399_v31 = vpop.eup %3398 }
 0x555   : > { %3132 = vmatprep.mubr.msk.bf16.mxu1 %vm1303_vm4, %v1392_v57  ;;  %v1383_v27 = vmul.f32 %v3399_v31, %v3383_v20  ;;  %v3401_v43 = vpop.eup %3400 }
 0x556   : > { %v1385_v4 = vmul.f32 %v3401_v43, %v3385_v21  ;;  %v2920_v43 = vld [vmem:[%s4397_s7 + $0x5] ss:$0 sm:$0xff] }
 0x557   : > { %v1393_v33 = vpack.c.bf16 %v1383_v27, %v1381_v32 }
 0x558   : > { %v3403_v1 = vpop.eup %3402 }
 0x559   : > { %v3405_v38 = vpop.eup %3404  ;;  %3133 = vmatmul.mubr.msk.bf16.vlgmr.msra.gmra.mxu1 %vm1303_vm4, %v1393_v33  ;;  %v1387_v8 = vmul.f32 %v3403_v1, %v3389_v61 }
 0x55a   : > { %3141 = vmatpush3.bf16.msra.mxu1 %v1505_v60  ;;  %v1389_v13 = vmul.f32 %v3405_v38, %v3387_v23 }
 0x55b   : > { %v1394_v44 = vpack.c.bf16 %v1387_v8, %v1385_v4  ;;  %3142 = vmatprep.subr.bf16.mxu1 %v3345_v0 }
 0x55c   : > { %v3407_v36 = vpop.eup %3406 }
 0x55d   : > { %v1391_v40 = vmul.f32 %v3407_v36, %v3391_v28  ;;  %3136 = vmatprep.mubr.msk.bf16.mxu1 %vm1303_vm4, %v1394_v44 }
 0x55e   : > { %3143 = vmatpush3.bf16.msra.mxu1 %v3345_v0 }
 0x55f   : > { %v1395_v59 = vpack.c.bf16 %v1391_v40, %v1389_v13  ;;  %3277 = vmatprep.subr.msk.bf16.mxu1 %vm950_vm2, %v3346_v9 }
 0x561   : > { %3137 = vmatmul.mubr.msk.bf16.gmra.mxu1 %vm1303_vm4, %v1395_v59 }
 0x562   : > { %3144 = vmatprep.mubr.msk.bf16.mxu1 %vm781_vm1, %v3863_v58 }
 0x569   : > { %3145 = vmatmul.mubr.msk.bf16.vlgmr.msra.gmra.mxu1 %vm781_vm1, %v3869_v6 }
 0x56a   : > { %3148 = vmatprep.mubr.msk.bf16.mxu1 %vm781_vm1, %v3882_v17  ;;  %3165 = vmatpush3.bf16.msra.mxu1 %v1683_v14 }
 0x56b   : > { %3166 = vmatprep.subr.bf16.mxu1 %v3347_v11 }
 0x56e   : > { %3167 = vmatpush3.bf16.msra.mxu1 %v3347_v11 }
 0x571   : > { %3149 = vmatmul.mubr.msk.bf16.gmra.mxu1 %vm781_vm1, %v3888_v24 }
 0x572   : > { %3168 = vmatprep.mubr.msk.bf16.mxu1 %vm781_vm1, %v3863_v58 }
 0x579   : > { %3169 = vmatmul.mubr.msk.bf16.vlgmr.msra.gmra.mxu1 %vm781_vm1, %v3869_v6 }
 0x57a   : > { %3172 = vmatprep.mubr.msk.bf16.mxu1 %vm781_vm1, %v3882_v17 }
 0x581   : > { %3173 = vmatmul.mubr.msk.bf16.gmra.mxu1 %vm781_vm1, %v3888_v24  ;;  %v2898_v24 = vld [vmem:[%s4397_s7 + $0x1] ss:$0 sm:$0xff] }
 0x619   : > { %v3134_v63 = vpop.f32.mrf.mxu1 }
 0x61b   : > { %v1446_v2 = vpop.f32.mrf.mxu1 }
 0x61d   : > { %v3135_v16 = vpop.f32.mrf.mxu1 }
 0x61e   : > { %v1478_v31 = vpack.c.bf16 %v3135_v16, %v3134_v63 }
 0x61f   : > { %v1449_v58 = vpop.f32.mrf.mxu1 }
 0x620   : > { %v1477_v54 = vpack.c.bf16 %v1449_v58, %v1446_v2 }
 0x621   : > { %v3138_v56 = vpop.f32.mrf.mxu1 }
 0x623   : > { %v1462_v18 = vpop.f32.mrf.mxu1 }
 0x625   : > { %v3139_v6 = vpop.f32.mrf.mxu1 }
 0x626   : > { %v1480_v9 = vpack.c.bf16 %v3139_v6, %v3138_v56 }
 0x627   : > { %v1465_v7 = vpop.f32.mrf.mxu1 }
 0x628   : > { %v1479_v27 = vpack.c.bf16 %v1465_v7, %v1462_v18 }
 0x629   : > { %v3146_v10 = vpop.f32.mrf.mxu1 }
 0x62a   : > { %v1550_v61 = vadd.f32 %v3146_v10, %v2898_v24 }
 0x62b   : > { %v1541_v17 = vpop.f32.mrf.mxu1 }
 0x62c   : > { %v1542_v50 = vadd.f32 %v2898_v24, %v1541_v17 }
 0x62d   : > { %v3147_v20 = vpop.f32.mrf.mxu1 }
 0x62e   : > { %v1553_v21 = vadd.f32 %v3147_v20, %v2898_v24 }
 0x62f   : > { %v1544_v22 = vpop.f32.mrf.mxu1 }
 0x630   : > { %v1545_v23 = vadd.f32 %v2898_v24, %v1544_v22  ;;  %v1751_v28 = vpack.c.bf16 %v1553_v21, %v1550_v61 }
 0x631   : > { %v3150_v3 = vpop.f32.mrf.mxu1 }
 0x632   : > { %v1750_v26 = vpack.c.bf16 %v1545_v23, %v1542_v50  ;;  %v1566_v47 = vadd.f32 %v3150_v3, %v2898_v24 }
 0x633   : > { %v1557_v30 = vpop.f32.mrf.mxu1 }
 0x634   : > { %3184 = vmatprep.mubr.msk.bf16.mxu0 %vm1205_vm3, %v1750_v26  ;;  %v1558_v46 = vadd.f32 %v2898_v24, %v1557_v30 }
 0x635   : > { %v3151_v35 = vpop.f32.mrf.mxu1  ;;  %3185 = vmatmul.mubr.msk.bf16.vlgmr.msra.gmra.mxu0 %vm1205_vm3, %v1751_v28 }
 0x636   : > { %3219 = vmatpush3.bf16.msra.mxu0 %v2139_v34  ;;  %v1569_v37 = vadd.f32 %v3151_v35, %v2898_v24 }
 0x637   : > { %v1560_v39 = vpop.f32.mrf.mxu1 }
 0x638   : > { %v1561_v29 = vadd.f32 %v2898_v24, %v1560_v39  ;;  %v1753_v52 = vpack.c.bf16 %v1569_v37, %v1566_v47 }
 0x639   : > { %v3170_v49 = vpop.f32.mrf.mxu1 }
 0x63a   : > { %v1752_v51 = vpack.c.bf16 %v1561_v29, %v1558_v46  ;;  %v1728_v13 = vadd.f32 %v3170_v49, %v2920_v43 }
 0x63b   : > { %v1719_v53 = vpop.f32.mrf.mxu1 }
 0x63c   : > { %3188 = vmatprep.mubr.msk.bf16.mxu0 %vm1205_vm3, %v1752_v51  ;;  %v1720_v14 = vadd.f32 %v2920_v43, %v1719_v53 }
 0x63d   : > { %v3171_v45 = vpop.f32.mrf.mxu1  ;;  %3189 = vmatmul.mubr.msk.bf16.gmra.mxu0 %vm1205_vm3, %v1753_v52 }
 0x63e   : > { %3220 = vmatprep.mubr.msk.bf16.mxu0 %vm1205_vm3, %v1477_v54  ;;  %v1731_v36 = vadd.f32 %v3171_v45, %v2920_v43 }
 0x63f   : > { %v1722_v42 = vpop.f32.mrf.mxu1 }
 0x640   : > { %v1948_v40 = vpack.c.bf16 %v1731_v36, %v1728_v13  ;;  %v1723_v59 = vadd.f32 %v2920_v43, %v1722_v42 }
 0x641   : > { %v3174_v57 = vpop.f32.mrf.mxu1 }
 0x642   : > { %v1744_v60 = vadd.f32 %v3174_v57, %v2920_v43  ;;  %v1947_v11 = vpack.c.bf16 %v1723_v59, %v1720_v14 }
 0x643   : > { %v1735_v32 = vpop.f32.mrf.mxu1 }
 0x644   : > { %v1736_v38 = vadd.f32 %v2920_v43, %v1735_v32 }
 0x645   : > { %v3175_v33 = vpop.f32.mrf.mxu1  ;;  %3221 = vmatmul.mubr.msk.bf16.vlgmr.msra.gmra.mxu0 %vm1205_vm3, %v1478_v31 }
 0x646   : > { %v1747_v0 = vadd.f32 %v3175_v33, %v2920_v43  ;;  %3224 = vmatprep.mubr.msk.bf16.mxu0 %vm1205_vm3, %v1479_v27 }
 0x647   : > { %v1738_v1 = vpop.f32.mrf.mxu1 }
 0x648   : > { %v1950_v4 = vpack.c.bf16 %v1747_v0, %v1744_v60  ;;  %v1739_v8 = vadd.f32 %v2920_v43, %v1738_v1 }
 0x64a   : > { %v1949_v44 = vpack.c.bf16 %v1739_v8, %v1736_v38  ;;  %3192 = vmatprep.subr.bf16.mxu1 %v1950_v4 }
 0x64b   : > { %3193 = vmatpush3.bf16.msra.mxu1 %v1950_v4 }
 0x64c   : > { %3194 = vmatprep.subr.bf16.mxu1 %v1949_v44 }
 0x64d   : > { %3225 = vmatmul.mubr.msk.bf16.gmra.mxu0 %vm1205_vm3, %v1480_v9 }
 0x64f   : > { %3195 = vmatpush3.bf16.msra.mxu1 %v1949_v44 }
 0x650   : > { %3196 = vmatprep.subr.bf16.mxu1 %v1948_v40 }
 0x653   : > { %3197 = vmatpush3.bf16.msra.mxu1 %v1948_v40 }
 0x654   : > { %3198 = vmatprep.subr.bf16.mxu1 %v1947_v11 }
 0x657   : > { %3199 = vmatpush3.bf16.msra.mxu1 %v1947_v11 }
 0x6f5   : > { %v3186_v15 = vpop.f32.mrf.mxu0 }
 0x6f6   : > { %v1849_v58 = vmul.f32 0.28867513, %v3186_v15 }
 0x6f7   : > { %v1816_v63 = vpop.f32.mrf.mxu0 }
 0x6f8   : > { %v1847_v2 = vmul.f32 0.28867513, %v1816_v63  ;;  %v1861_v17 = vsel %vm1303_vm4, %v1849_v58, -inf }
 0x6f9   : > { %v3187_v16 = vpop.f32.mrf.mxu0 }
 0x6fa   : > { %v1855_v56 = vsel %vm1303_vm4, %v1847_v2, -inf  ;;  %v1850_v10 = vmul.f32 0.28867513, %v3187_v16 }
 0x6fb   : > { %1856 = vmax.xlane.f32.xlu0 %v1855_v56  ;;  %v1819_v18 = vpop.f32.mrf.mxu0 }
 0x6fc   : > { %v1848_v6 = vmul.f32 0.28867513, %v1819_v18  ;;  %v1864_v23 = vsel %vm1303_vm4, %v1850_v10, -inf }
 0x6fd   : > { %v3190_v7 = vpop.f32.mrf.mxu0 }
 0x6fe   : > { %v1858_v20 = vsel %vm1303_vm4, %v1848_v6, -inf  ;;  %v1853_v50 = vmul.f32 0.28867513, %v3190_v7  ;;  %v3349_v7 = vld [vmem:[%s4398_s8 + $0x8] sm:$0x3f]  }
 0x6ff   : > { %1862 = vmax.xlane.f32.xlu0 %v1861_v17  ;;  %1859 = vmax.xlane.f32.xlu1 %v1858_v20  ;;  %v1832_v24 = vpop.f32.mrf.mxu0 }
 0x700   : > { %v1851_v21 = vmul.f32 0.28867513, %v1832_v24  ;;  %v1873_v30 = vsel %vm1303_vm4, %v1853_v50, -inf  ;;  %3282 = vmatprep.subr.msk.bf16.mxu1 %vm2052_vm5, %v3349_v7 }
 0x701   : > { %v3191_v22 = vpop.f32.mrf.mxu0 }
 0x702   : > { %v1867_v61 = vsel %vm1303_vm4, %v1851_v21, -inf  ;;  %v1854_v28 = vmul.f32 0.28867513, %v3191_v22 }
 0x703   : > { %1865 = vmax.xlane.f32.xlu1 %v1864_v23  ;;  %1868 = vmax.xlane.f32.xlu0 %v1867_v61  ;;  %v1835_v3 = vpop.f32.mrf.mxu0 }
 0x704   : > { %v1852_v26 = vmul.f32 0.28867513, %v1835_v3  ;;  %v1876_v35 = vsel %vm1303_vm4, %v1854_v28, -inf }
 0x706   : > { %v1870_v34 = vsel %vm1303_vm4, %v1852_v26, -inf }
 0x707   : > { %1874 = vmax.xlane.f32.xlu0 %v1873_v30  ;;  %1871 = vmax.xlane.f32.xlu1 %v1870_v34 }
 0x70b   : > { %1877 = vmax.xlane.f32.xlu1 %v1876_v35 }
 0x784   : > { %v1857_v37 = vpop.xlane.xlu0 %1856 }
 0x785   : > { %v1879_v39 = vsub.f32 %v1847_v2, %v1857_v37 }
 0x787   : > { %v1887_v46 = vmul.f32 1.442695, %v1879_v39 }
 0x788   : > { %v1863_v29 = vpop.xlane.xlu0 %1862  ;;  %v1860_v47 = vpop.xlane.xlu1 %1859 }
 0x789   : > { %3408 = vpow2.f32 %v1887_v46  ;;  %v1881_v49 = vsub.f32 %v1849_v58, %v1863_v29  ;;  %v1880_v51 = vsub.f32 %v1848_v6, %v1860_v47  ;;  %v2054_v47 = vsel %vm2052_vm5, %v3349_v7, 0 }
 0x78b   : > { %v1891_v52 = vmul.f32 1.442695, %v1881_v49  ;;  %v1889_v53 = vmul.f32 1.442695, %v1880_v51 }
 0x78c   : > { %v1866_v54 = vpop.xlane.xlu1 %1865  ;;  %v1869_v45 = vpop.xlane.xlu0 %1868 }
 0x78d   : > { %3410 = vpow2.f32 %v1891_v52  ;;  %v1882_v42 = vsub.f32 %v1850_v10, %v1866_v54  ;;  %v1883_v57 = vsub.f32 %v1851_v21, %v1869_v45 }
 0x78e   : > { %3412 = vpow2.f32 %v1889_v53 }
 0x78f   : > { %v1893_v31 = vmul.f32 1.442695, %v1882_v42  ;;  %v1895_v32 = vmul.f32 1.442695, %v1883_v57 }
 0x790   : > { %v1875_v27 = vpop.xlane.xlu0 %1874  ;;  %v1872_v43 = vpop.xlane.xlu1 %1871 }
 0x791   : > { %3414 = vpow2.f32 %v1893_v31  ;;  %v1885_v33 = vsub.f32 %v1853_v50, %v1875_v27  ;;  %v1884_v60 = vsub.f32 %v1852_v26, %v1872_v43 }
 0x792   : > { %3416 = vpow2.f32 %v1895_v32 }
 0x793   : > { %v1899_v0 = vmul.f32 1.442695, %v1885_v33  ;;  %v1897_v1 = vmul.f32 1.442695, %v1884_v60 }
 0x794   : > { %v1878_v38 = vpop.xlane.xlu1 %1877 }
 0x795   : > { %3418 = vpow2.f32 %v1899_v0  ;;  %v1886_v4 = vsub.f32 %v1854_v28, %v1878_v38 }
 0x796   : > { %v3409_v8 = vpop.eup %3408  ;;  %3420 = vpow2.f32 %v1897_v1 }
 0x797   : > { %v1901_v36 = vmul.f32 1.442695, %v1886_v4  ;;  %v1903_v44 = vsel %vm1303_vm4, %v3409_v8, 0.0 }
 0x798   : > { %1904 = vadd.xlane.f32.xlu0 %v1903_v44 }
 0x799   : > { %3422 = vpow2.f32 %v1901_v36 }
 0x79a   : > { %v3411_v9 = vpop.eup %3410 }
 0x79b   : > { %v3413_v13 = vpop.eup %3412  ;;  %v1909_v40 = vsel %vm1303_vm4, %v3411_v9, 0.0 }
 0x79c   : > { %1910 = vadd.xlane.f32.xlu0 %v1909_v40  ;;  %v1906_v59 = vsel %vm1303_vm4, %v3413_v13, 0.0 }
 0x79d   : > { %1907 = vadd.xlane.f32.xlu1 %v1906_v59 }
 0x79e   : > { %v3415_v14 = vpop.eup %3414 }
 0x79f   : > { %v3417_v11 = vpop.eup %3416  ;;  %v1912_v15 = vsel %vm1303_vm4, %v3415_v14, 0.0 }
 0x7a0   : > { %v1915_v63 = vsel %vm1303_vm4, %v3417_v11, 0.0 }
 0x7a1   : > { %1916 = vadd.xlane.f32.xlu0 %v1915_v63  ;;  %1913 = vadd.xlane.f32.xlu1 %v1912_v15 }
 0x7a2   : > { %v3419_v2 = vpop.eup %3418 }
 0x7a3   : > { %v3421_v16 = vpop.eup %3420  ;;  %v1921_v58 = vsel %vm1303_vm4, %v3419_v2, 0.0 }
 0x7a4   : > { %v1918_v56 = vsel %vm1303_vm4, %v3421_v16, 0.0 }
 0x7a5   : > { %1922 = vadd.xlane.f32.xlu0 %v1921_v58  ;;  %1919 = vadd.xlane.f32.xlu1 %v1918_v56  ;;  %v2947_v56 = vld [vmem:[%s4399_s9] ss:$0 sm:$0xff] }
 0x7a6   : > { %v3423_v18 = vpop.eup %3422 }
 0x7a7   : > { %v1924_v6 = vsel %vm1303_vm4, %v3423_v18, 0.0 }
 0x7a9   : > { %1925 = vadd.xlane.f32.xlu1 %v1924_v6 }
 0x821   : > { %v1905_v10 = vpop.xlane.xlu0 %1904 }
 0x822   : > { %3424 = vrcp.f32 %v1905_v10 }
 0x825   : > { %v1911_v17 = vpop.xlane.xlu0 %1910 }
 0x826   : > { %v1908_v20 = vpop.xlane.xlu1 %1907 }
 0x827   : > { %3426 = vrcp.f32 %v1908_v20 }
 0x828   : > { %3428 = vrcp.f32 %v1911_v17 }
 0x82a   : > { %v1917_v24 = vpop.xlane.xlu0 %1916  ;;  %v1914_v21 = vpop.xlane.xlu1 %1913 }
 0x82b   : > { %3430 = vrcp.f32 %v1914_v21 }
 0x82c   : > { %3432 = vrcp.f32 %v1917_v24 }
 0x82e   : > { %v1923_v22 = vpop.xlane.xlu0 %1922  ;;  %v1920_v50 = vpop.xlane.xlu1 %1919 }
 0x82f   : > { %3434 = vrcp.f32 %v1920_v50  ;;  %v3425_v23 = vpop.eup %3424 }
 0x830   : > { %3436 = vrcp.f32 %v1923_v22  ;;  %v1928_v26 = vmul.f32 %v3425_v23, %v3409_v8 }
 0x832   : > { %v1926_v61 = vpop.xlane.xlu1 %1925 }
 0x833   : > { %3438 = vrcp.f32 %v1926_v61 }
 0x834   : > { %v3427_v3 = vpop.eup %3426 }
 0x835   : > { %v1930_v28 = vmul.f32 %v3427_v3, %v3413_v13  ;;  %v3429_v30 = vpop.eup %3428 }
 0x836   : > { %v1932_v37 = vmul.f32 %v3429_v30, %v3411_v9  ;;  %v3222_v9 = vpop.f32.mrf.mxu0 }
 0x837   : > { %v1943_v34 = vpack.c.bf16 %v1930_v28, %v1928_v26 }
 0x838   : > { %v3431_v35 = vpop.eup %3430  ;;  %v2175_v13 = vpop.f32.mrf.mxu0 }
 0x839   : > { %3200 = vmatprep.mubr.msk.bf16.mxu1 %vm1303_vm4, %v1943_v34  ;;  %v1934_v39 = vmul.f32 %v3431_v35, %v3415_v14  ;;  %v3433_v46 = vpop.eup %3432 }
 0x83a   : > { %v1936_v52 = vmul.f32 %v3433_v46, %v3417_v11  ;;  %v3223_v40 = vpop.f32.mrf.mxu0 }
 0x83b   : > { %v1944_v29 = vpack.c.bf16 %v1934_v39, %v1932_v37 }
 0x83c   : > { %v3435_v49 = vpop.eup %3434  ;;  %v2178_v59 = vpop.f32.mrf.mxu0 }
 0x83d   : > { %v3437_v51 = vpop.eup %3436  ;;  %3201 = vmatmul.mubr.msk.bf16.vlgmr.msra.gmra.mxu1 %vm1303_vm4, %v1944_v29  ;;  %v1938_v53 = vmul.f32 %v3435_v49, %v3421_v16 }
 0x83e   : > { %3209 = vmatpush3.bf16.msra.mxu1 %v2054_v47  ;;  %v1940_v42 = vmul.f32 %v3437_v51, %v3419_v2  ;;  %v3226_v15 = vpop.f32.mrf.mxu0 }
 0x83f   : > { %v1945_v45 = vpack.c.bf16 %v1938_v53, %v1936_v52 }
 0x840   : > { %v3439_v54 = vpop.eup %3438  ;;  %v2191_v7 = vpop.f32.mrf.mxu0 }
 0x841   : > { %v1942_v57 = vmul.f32 %v3439_v54, %v3423_v18  ;;  %3204 = vmatprep.mubr.msk.bf16.mxu1 %vm1303_vm4, %v1945_v45 }
 0x842   : > { %v3227_v61 = vpop.f32.mrf.mxu0 }
 0x843   : > { %v1946_v31 = vpack.c.bf16 %v1942_v57, %v1940_v42 }
 0x844   : > { %v2194_v39 = vpop.f32.mrf.mxu0 }
 0x845   : > { %3205 = vmatmul.mubr.msk.bf16.gmra.mxu1 %vm1303_vm4, %v1946_v31 }
 0x8fd   : > { %v3202_v32 = vpop.f32.mrf.mxu1 }
 0x8ff   : > { %v1997_v27 = vpop.f32.mrf.mxu1 }
 0x901   : > { %v3203_v43 = vpop.f32.mrf.mxu1 }
 0x902   : > { %v2029_v0 = vpack.c.bf16 %v3203_v43, %v3202_v32 }
 0x903   : > { %v2000_v33 = vpop.f32.mrf.mxu1 }
 0x904   : > { %v2028_v60 = vpack.c.bf16 %v2000_v33, %v1997_v27 }
 0x905   : > { %v3206_v1 = vpop.f32.mrf.mxu1 }
 0x906   : > { %3210 = vmatprep.mubr.msk.bf16.mxu1 %vm1205_vm3, %v2028_v60 }
 0x907   : > { %v2013_v38 = vpop.f32.mrf.mxu1  ;;  %3211 = vmatmul.mubr.msk.bf16.vlgmr.msra.gmra.mxu1 %vm1205_vm3, %v2029_v0 }
 0x909   : > { %v3207_v4 = vpop.f32.mrf.mxu1 }
 0x90a   : > { %v2031_v44 = vpack.c.bf16 %v3207_v4, %v3206_v1 }
 0x90b   : > { %v2016_v8 = vpop.f32.mrf.mxu1 }
 0x90c   : > { %v2030_v36 = vpack.c.bf16 %v2016_v8, %v2013_v38 }
 0x90e   : > { %3214 = vmatprep.mubr.msk.bf16.mxu1 %vm1205_vm3, %v2030_v36 }
 0x90f   : > { %3215 = vmatmul.mubr.msk.bf16.gmra.mxu1 %vm1205_vm3, %v2031_v44 }
 0x9c7   : > { %v3212_v14 = vpop.f32.mrf.mxu1 }
 0x9c8   : > { %v2184_v11 = vadd.f32 %v3222_v9, %v3212_v14 }
 0x9c9   : > { %v2090_v63 = vpop.f32.mrf.mxu1 }
 0x9ca   : > { %v2176_v2 = vadd.f32 %v2175_v13, %v2090_v63  ;;  %v2208_v16 = vadd.f32 %v2184_v11, %v3755_v55 }
 0x9cb   : > { %v3213_v58 = vpop.f32.mrf.mxu1 }
 0x9cc   : > { %v2206_v18 = vadd.f32 %v2176_v2, %v3741_v41  ;;  %v2187_v6 = vadd.f32 %v3223_v40, %v3213_v58  ;;  %v4130_v24 = vadd.f32 %v2947_v56, %v2208_v16 }
 0x9cd   : > { %v2093_v10 = vpop.f32.mrf.mxu1 }
 0x9ce   : > { %v4128_v17 = vadd.f32 %v2947_v56, %v2206_v18  ;;  %v2179_v20 = vadd.f32 %v2178_v59, %v2093_v10  ;;  %v2209_v21 = vadd.f32 %v2187_v6, %v3762_v62  ;;  %v2237_v34 = vsel %vm781_vm1, %v4130_v24, 0.0 }
 0x9cf   : > { %v3216_v22 = vpop.f32.mrf.mxu1 }
 0x9d0   : > { %v2207_v55 = vadd.f32 %v2179_v20, %v3748_v48  ;;  %v2200_v50 = vadd.f32 %v3226_v15, %v3216_v22  ;;  %v2231_v23 = vsel %vm781_vm1, %v4128_v17, 0.0  ;;  %v4138_v28 = vadd.f32 %v2947_v56, %v2209_v21 }
 0x9d1   : > { %2232 = vadd.xlane.f32.xlu0 %v2231_v23  ;;  %v2106_v41 = vpop.f32.mrf.mxu1 }
 0x9d2   : > { %v4136_v3 = vadd.f32 %v2947_v56, %v2207_v55  ;;  %v2192_v26 = vadd.f32 %v2191_v7, %v2106_v41  ;;  %v2212_v62 = vadd.f32 %v2200_v50, %v3783_v19  ;;  %v2240_v49 = vsel %vm781_vm1, %v4138_v28, 0.0 }
 0x9d3   : > { %v3217_v30 = vpop.f32.mrf.mxu1 }
 0x9d4   : > { %v2210_v48 = vadd.f32 %v2192_v26, %v3769_v5  ;;  %v2203_v35 = vadd.f32 %v3227_v61, %v3217_v30  ;;  %v2234_v37 = vsel %vm781_vm1, %v4136_v3, 0.0  ;;  %v4150_v51 = vadd.f32 %v2947_v56, %v2212_v62  ;;  %v3350_v30 = vld [vmem:[%s4402_s12 + $0x8] ss:$0 sps:$4 sm:$0xff]   ;;  %v3351_v62 = vld [vmem:[%s4402_s12] sm:$0xff]  }
 0x9d5   : > { %2238 = vadd.xlane.f32.xlu0 %v2237_v34  ;;  %2235 = vadd.xlane.f32.xlu1 %v2234_v37  ;;  %v2109_v46 = vpop.f32.mrf.mxu1  ;;  %v2399_v34 = vsel %vm950_vm2, %v3350_v30, 0 }
 0x9d6   : > { %v4146_v29 = vadd.f32 %v2947_v56, %v2210_v48  ;;  %v2195_v47 = vadd.f32 %v2194_v39, %v2109_v46  ;;  %v2213_v19 = vadd.f32 %v2203_v35, %v3790_v25  ;;  %v2249_v42 = vsel %vm781_vm1, %v4150_v51, 0.0  ;;  %3284 = vmatprep.subr.msk.bf16.mxu1 %vm950_vm2, %v3350_v30 }
 0x9d7   : > { %3229 = vmatpush3.bf16.msra.mxu1 %v2399_v34 }
 0x9d8   : > { %v2211_v5 = vadd.f32 %v2195_v47, %v3776_v12  ;;  %v2243_v52 = vsel %vm781_vm1, %v4146_v29, 0.0  ;;  %v4158_v54 = vadd.f32 %v2947_v56, %v2213_v19  ;;  %3230 = vmatprep.subr.bf16.mxu1 %v3351_v62 }
 0x9d9   : > { %2241 = vadd.xlane.f32.xlu1 %v2240_v49  ;;  %2244 = vadd.xlane.f32.xlu0 %v2243_v52 }
 0x9da   : > { %v4156_v53 = vadd.f32 %v2947_v56, %v2211_v5  ;;  %v2252_v12 = vsel %vm781_vm1, %v4158_v54, 0.0 }
 0x9db   : > { %3231 = vmatpush3.bf16.msra.mxu1 %v3351_v62 }
 0x9dc   : > { %v2246_v45 = vsel %vm781_vm1, %v4156_v53, 0.0 }
 0x9dd   : > { %2247 = vadd.xlane.f32.xlu1 %v2246_v45  ;;  %2250 = vadd.xlane.f32.xlu0 %v2249_v42 }
 0x9e1   : > { %2253 = vadd.xlane.f32.xlu1 %v2252_v12 }
 0xa5a   : > { %v2233_v25 = vpop.xlane.xlu0 %2232 }
 0xa5b   : > { %v2255_v57 = vmul.f32 0.041666668, %v2233_v25 }
 0xa5d   : > { %v4167_v31 = vsub.f32 %v4128_v17, %v2255_v57 }
 0xa5e   : > { %v2239_v32 = vpop.xlane.xlu0 %2238  ;;  %v2236_v27 = vpop.xlane.xlu1 %2235 }
 0xa5f   : > { %v2257_v43 = vmul.f32 0.041666668, %v2239_v32  ;;  %v2256_v33 = vmul.f32 0.041666668, %v2236_v27  ;;  %v2271_v60 = vmul.f32 %v4167_v31, %v4167_v31 }
 0xa61   : > { %v4172_v0 = vsub.f32 %v4130_v24, %v2257_v43  ;;  %v4175_v1 = vsub.f32 %v4136_v3, %v2256_v33  ;;  %v2279_v38 = vsel %vm781_vm1, %v2271_v60, 0.0 }
 0xa62   : > { %v2242_v4 = vpop.xlane.xlu1 %2241  ;;  %2280 = vadd.xlane.f32.xlu0 %v2279_v38  ;;  %v2245_v8 = vpop.xlane.xlu0 %2244 }
 0xa63   : > { %v2258_v36 = vmul.f32 0.041666668, %v2242_v4  ;;  %v2259_v44 = vmul.f32 0.041666668, %v2245_v8  ;;  %v2272_v9 = vmul.f32 %v4175_v1, %v4175_v1  ;;  %v2273_v13 = vmul.f32 %v4172_v0, %v4172_v0 }
 0xa65   : > { %v4183_v40 = vsub.f32 %v4138_v28, %v2258_v36  ;;  %v4186_v59 = vsub.f32 %v4146_v29, %v2259_v44  ;;  %v2282_v14 = vsel %vm781_vm1, %v2272_v9, 0.0  ;;  %v2285_v11 = vsel %vm781_vm1, %v2273_v13, 0.0  ;;  %v2948_v13 = vld [vmem:[%s4400_s10] ss:$0 sm:$0xff] }
 0xa66   : > { %2283 = vadd.xlane.f32.xlu1 %v2282_v14  ;;  %v2248_v15 = vpop.xlane.xlu1 %2247  ;;  %2286 = vadd.xlane.f32.xlu0 %v2285_v11  ;;  %v2251_v63 = vpop.xlane.xlu0 %2250 }
 0xa67   : > { %v2260_v2 = vmul.f32 0.041666668, %v2248_v15  ;;  %v2261_v16 = vmul.f32 0.041666668, %v2251_v63  ;;  %v2274_v58 = vmul.f32 %v4183_v40, %v4183_v40  ;;  %v2275_v56 = vmul.f32 %v4186_v59, %v4186_v59 }
 0xa69   : > { %v4195_v18 = vsub.f32 %v4156_v53, %v2260_v2  ;;  %v4198_v6 = vsub.f32 %v4150_v51, %v2261_v16  ;;  %v2288_v7 = vsel %vm781_vm1, %v2274_v58, 0.0  ;;  %v2291_v10 = vsel %vm781_vm1, %v2275_v56, 0.0  ;;  %v2949_v16 = vld [vmem:[%s4401_s11] ss:$0 sm:$0xff] }
 0xa6a   : > { %2289 = vadd.xlane.f32.xlu1 %v2288_v7  ;;  %v2254_v20 = vpop.xlane.xlu1 %2253  ;;  %2292 = vadd.xlane.f32.xlu0 %v2291_v10 }
 0xa6b   : > { %v2262_v21 = vmul.f32 0.041666668, %v2254_v20  ;;  %v2276_v22 = vmul.f32 %v4195_v18, %v4195_v18  ;;  %v2277_v55 = vmul.f32 %v4198_v6, %v4198_v6 }
 0xa6d   : > { %v4207_v50 = vsub.f32 %v4158_v54, %v2262_v21  ;;  %v2294_v23 = vsel %vm781_vm1, %v2276_v22, 0.0  ;;  %v2297_v61 = vsel %vm781_vm1, %v2277_v55, 0.0 }
 0xa6e   : > { %2295 = vadd.xlane.f32.xlu1 %v2294_v23  ;;  %2298 = vadd.xlane.f32.xlu0 %v2297_v61 }
 0xa6f   : > { %v2278_v41 = vmul.f32 %v4207_v50, %v4207_v50 }
 0xa71   : > { %v2300_v26 = vsel %vm781_vm1, %v2278_v41, 0.0 }
 0xa72   : > { %2301 = vadd.xlane.f32.xlu1 %v2300_v26 }
 0xaeb   : > { %v2281_v48 = vpop.xlane.xlu0 %2280 }
 0xaec   : > { %v2303_v35 = vmul.f32 0.041666668, %v2281_v48 }
 0xaee   : > { %v2311_v37 = vadd.f32 1e-05, %v2303_v35 }
 0xaef   : > { %v2284_v39 = vpop.xlane.xlu1 %2283  ;;  %v2287_v46 = vpop.xlane.xlu0 %2286 }
 0xaf0   : > { %3440 = vrsqrt.f32 %v2311_v37  ;;  %v2304_v47 = vmul.f32 0.041666668, %v2284_v39  ;;  %v2305_v49 = vmul.f32 0.041666668, %v2287_v46 }
 0xaf2   : > { %v2312_v19 = vadd.f32 1e-05, %v2304_v47  ;;  %v2313_v5 = vadd.f32 1e-05, %v2305_v49 }
 0xaf3   : > { %v2290_v52 = vpop.xlane.xlu1 %2289  ;;  %v2293_v45 = vpop.xlane.xlu0 %2292 }
 0xaf4   : > { %3442 = vrsqrt.f32 %v2312_v19  ;;  %v2306_v42 = vmul.f32 0.041666668, %v2290_v52  ;;  %v2307_v12 = vmul.f32 0.041666668, %v2293_v45  ;;  %v3355_v52 = vld [vmem:[%s4404_s14 + $0x10] sm:$0xff]   ;;  %v3356_v45 = vld [vmem:[%s4404_s14 + $0x8] sm:$0xff]  }
 0xaf5   : > { %3444 = vrsqrt.f32 %v2313_v5  ;;  %v3354_v5 = vld [vmem:[%s4404_s14 + $0x18] sm:$0xff]  }
 0xaf6   : > { %v2314_v25 = vadd.f32 1e-05, %v2306_v42  ;;  %v2315_v57 = vadd.f32 1e-05, %v2307_v12  ;;  %v3357_v42 = vld [vmem:[%s4404_s14] sm:$0xff]  }
 0xaf7   : > { %v2296_v32 = vpop.xlane.xlu1 %2295  ;;  %v2299_v27 = vpop.xlane.xlu0 %2298  ;;  %v2950_v12 = vld [vmem:[%s4403_s13] ss:$0 sm:$0xff] }
 0xaf8   : > { %3446 = vrsqrt.f32 %v2314_v25  ;;  %v2308_v43 = vmul.f32 0.041666668, %v2296_v32  ;;  %v2309_v33 = vmul.f32 0.041666668, %v2299_v27 }
 0xaf9   : > { %3448 = vrsqrt.f32 %v2315_v57 }
 0xafa   : > { %v2316_v60 = vadd.f32 1e-05, %v2308_v43  ;;  %v2317_v38 = vadd.f32 1e-05, %v2309_v33 }
 0xafb   : > { %v2302_v4 = vpop.xlane.xlu1 %2301 }
 0xafc   : > { %3450 = vrsqrt.f32 %v2316_v60  ;;  %v2310_v8 = vmul.f32 0.041666668, %v2302_v4 }
 0xafd   : > { %v3441_v36 = vpop.eup %3440  ;;  %3452 = vrsqrt.f32 %v2317_v38 }
 0xafe   : > { %v2318_v44 = vadd.f32 1e-05, %v2310_v8  ;;  %v2327_v9 = vmul.f32 %v3441_v36, %v4167_v31 }
 0xb00   : > { %3454 = vrsqrt.f32 %v2318_v44  ;;  %v2341_v63 = vmul.f32 %v2948_v13, %v2327_v9 }
 0xb01   : > { %v3443_v14 = vpop.eup %3442 }
 0xb02   : > { %v3445_v11 = vpop.eup %3444  ;;  %v2328_v15 = vmul.f32 %v3443_v14, %v4175_v1  ;;  %v2355_v20 = vadd.f32 %v2949_v16, %v2341_v63 }
 0xb03   : > { %v2329_v2 = vmul.f32 %v3445_v11, %v4172_v0 }
 0xb04   : > { %v2342_v58 = vmul.f32 %v2948_v13, %v2328_v15 }
 0xb05   : > { %v3447_v56 = vpop.eup %3446  ;;  %v2343_v31 = vmul.f32 %v2948_v13, %v2329_v2 }
 0xb06   : > { %v3449_v7 = vpop.eup %3448  ;;  %v2330_v10 = vmul.f32 %v3447_v56, %v4183_v40  ;;  %v2356_v21 = vadd.f32 %v2949_v16, %v2342_v58 }
 0xb07   : > { %v2331_v22 = vmul.f32 %v3449_v7, %v4186_v59  ;;  %v2357_v0 = vadd.f32 %v2949_v16, %v2343_v31 }
 0xb08   : > { %v2344_v55 = vmul.f32 %v2948_v13, %v2330_v10  ;;  %v2363_v23 = vpack.c.bf16 %v2356_v21, %v2355_v20 }
 0xb09   : > { %v3451_v1 = vpop.eup %3450  ;;  %v2345_v30 = vmul.f32 %v2948_v13, %v2331_v22 }
 0xb0a   : > { %v3453_v61 = vpop.eup %3452  ;;  %3232 = vmatprep.mubr.msk.bf16.mxu1 %vm781_vm1, %v2363_v23  ;;  %v2358_v41 = vadd.f32 %v2949_v16, %v2344_v55  ;;  %v2332_v26 = vmul.f32 %v3451_v1, %v4195_v18 }
 0xb0b   : > { %v2333_v34 = vmul.f32 %v3453_v61, %v4198_v6  ;;  %v2359_v35 = vadd.f32 %v2949_v16, %v2345_v30  ;;  %v3352_v6 = vld [vmem:[%s4404_s14 + $0x28] sm:$0xff]  }
 0xb0c   : > { %v2364_v62 = vpack.c.bf16 %v2358_v41, %v2357_v0  ;;  %v2346_v48 = vmul.f32 %v2948_v13, %v2332_v26  ;;  %3240 = vmatprep.subr.bf16.mxu0 %v3352_v6 }
 0xb0d   : > { %v3455_v40 = vpop.eup %3454  ;;  %v2347_v39 = vmul.f32 %v2948_v13, %v2333_v34  ;;  %3241 = vmatpush3.bf16.msra.mxu0 %v3352_v6 }
 0xb0e   : > { %3233 = vmatmul.mubr.msk.bf16.vlgmr.msra.gmra.mxu1 %vm781_vm1, %v2364_v62  ;;  %v2360_v59 = vadd.f32 %v2949_v16, %v2346_v48  ;;  %v2334_v37 = vmul.f32 %v3455_v40, %v4207_v50  ;;  %v3353_v50 = vld [vmem:[%s4404_s14 + $0x20] sm:$0xff]  }
 0xb0f   : > { %v2361_v49 = vadd.f32 %v2949_v16, %v2347_v39  ;;  %3242 = vmatprep.subr.bf16.mxu0 %v3353_v50 }
 0xb10   : > { %v2365_v46 = vpack.c.bf16 %v2360_v59, %v2359_v35  ;;  %v2348_v47 = vmul.f32 %v2948_v13, %v2334_v37 }
 0xb11   : > { %3243 = vmatpush3.bf16.msra.mxu0 %v3353_v50 }
 0xb12   : > { %3236 = vmatprep.mubr.msk.bf16.mxu1 %vm781_vm1, %v2365_v46  ;;  %v2362_v19 = vadd.f32 %v2949_v16, %v2348_v47  ;;  %3244 = vmatprep.subr.bf16.mxu0 %v3354_v5 }
 0xb14   : > { %v2366_v18 = vpack.c.bf16 %v2362_v19, %v2361_v49 }
 0xb15   : > { %3245 = vmatpush3.bf16.msra.mxu0 %v3354_v5 }
 0xb16   : > { %3237 = vmatmul.mubr.msk.bf16.gmra.mxu1 %vm781_vm1, %v2366_v18  ;;  %3246 = vmatprep.subr.bf16.mxu0 %v3355_v52 }
 0xb19   : > { %3247 = vmatpush3.bf16.msra.mxu0 %v3355_v52 }
 0xb1a   : > { %3248 = vmatprep.subr.bf16.mxu0 %v3356_v45 }
 0xb1d   : > { %3249 = vmatpush3.bf16.msra.mxu0 %v3356_v45 }
 0xb1e   : > { %3250 = vmatprep.subr.bf16.mxu0 %v3357_v42 }
 0xb21   : > { %3251 = vmatpush3.bf16.msra.mxu0 %v3357_v42 }
 0xbce   : > { %v3234_v25 = vpop.f32.mrf.mxu1 }
 0xbcf   : > { %v4261_v57 = vadd.f32 %v3234_v25, %v2950_v12 }
 0xbd0   : > { %v2435_v32 = vpop.f32.mrf.mxu1 }
 0xbd1   : > { %v2468_v27 = vmul.f32 %v4261_v57, %v4261_v57  ;;  %v4265_v43 = vadd.f32 %v2950_v12, %v2435_v32 }
 0xbd2   : > { %v3235_v33 = vpop.f32.mrf.mxu1 }
 0xbd3   : > { %v2476_v60 = vmul.f32 %v2468_v27, %v4261_v57  ;;  %v2466_v38 = vmul.f32 %v4265_v43, %v4265_v43  ;;  %v4270_v4 = vadd.f32 %v3235_v33, %v2950_v12 }
 0xbd4   : > { %v2438_v8 = vpop.f32.mrf.mxu1 }
 0xbd5   : > { %v2484_v36 = vmul.f32 0.044715, %v2476_v60  ;;  %v2474_v44 = vmul.f32 %v2466_v38, %v4265_v43  ;;  %v2469_v9 = vmul.f32 %v4270_v4, %v4270_v4  ;;  %v4275_v13 = vadd.f32 %v2950_v12, %v2438_v8 }
 0xbd6   : > { %v3238_v14 = vpop.f32.mrf.mxu1 }
 0xbd7   : > { %v2492_v11 = vadd.f32 %v2484_v36, %v4261_v57  ;;  %v2482_v15 = vmul.f32 0.044715, %v2474_v44  ;;  %v2477_v63 = vmul.f32 %v2469_v9, %v4270_v4  ;;  %v2467_v2 = vmul.f32 %v4275_v13, %v4275_v13 }
 0xbd8   : > { %v4281_v16 = vadd.f32 %v3238_v14, %v2950_v12  ;;  %v2451_v58 = vpop.f32.mrf.mxu1 }
 0xbd9   : > { %v2500_v56 = vmul.f32 0.7978846, %v2492_v11  ;;  %v2490_v7 = vadd.f32 %v2482_v15, %v4265_v43  ;;  %v2485_v31 = vmul.f32 0.044715, %v2477_v63  ;;  %v2475_v10 = vmul.f32 %v2467_v2, %v4275_v13 }
 0xbda   : > { %v2472_v20 = vmul.f32 %v4281_v16, %v4281_v16  ;;  %v4287_v21 = vadd.f32 %v2950_v12, %v2451_v58  ;;  %v3239_v22 = vpop.f32.mrf.mxu1 }
 0xbdb   : > { %v2498_v55 = vmul.f32 0.7978846, %v2490_v7  ;;  %v2493_v23 = vadd.f32 %v2485_v31, %v4270_v4  ;;  %v2483_v1 = vmul.f32 0.044715, %v2475_v10  ;;  %3456 = vtanh.f32 %v2500_v56 }
 0xbdc   : > { %v2480_v61 = vmul.f32 %v2472_v20, %v4281_v16  ;;  %v2470_v0 = vmul.f32 %v4287_v21, %v4287_v21  ;;  %v4293_v41 = vadd.f32 %v3239_v22, %v2950_v12  ;;  %v2454_v26 = vpop.f32.mrf.mxu1 }
 0xbdd   : > { %3458 = vtanh.f32 %v2498_v55  ;;  %v2501_v30 = vmul.f32 0.7978846, %v2493_v23  ;;  %v2491_v34 = vadd.f32 %v2483_v1, %v4275_v13  ;;  %v2455_v62 = vadd.f32 %v2950_v12, %v2454_v26 }
 0xbde   : > { %v2488_v48 = vmul.f32 0.044715, %v2480_v61  ;;  %v2478_v40 = vmul.f32 %v2470_v0, %v4287_v21  ;;  %v2473_v35 = vmul.f32 %v4293_v41, %v4293_v41 }
 0xbdf   : > { %3460 = vtanh.f32 %v2501_v30  ;;  %v2499_v59 = vmul.f32 0.7978846, %v2491_v34  ;;  %v2471_v37 = vmul.f32 %v2455_v62, %v2455_v62 }
 0xbe0   : > { %v2496_v39 = vadd.f32 %v2488_v48, %v4281_v16  ;;  %v2486_v46 = vmul.f32 0.044715, %v2478_v40  ;;  %v2481_v47 = vmul.f32 %v2473_v35, %v4293_v41  ;;  %v3358_v35 = vld [vmem:[%s4406_s16 + $0x8] ss:$0 sps:$4 sm:$0xff]  }
 0xbe1   : > { %3462 = vtanh.f32 %v2499_v59  ;;  %v2479_v49 = vmul.f32 %v2471_v37, %v2455_v62  ;;  %v3535_v59 = vmov 0.0   ;;  %v2724_v37 = vsel %vm950_vm2, %v3358_v35, 0 }
 0xbe2   : > { %v2504_v19 = vmul.f32 0.7978846, %v2496_v39  ;;  %v2494_v18 = vadd.f32 %v2486_v46, %v4287_v21  ;;  %v2489_v6 = vmul.f32 0.044715, %v2481_v47  ;;  %3260 = vmatprep.subr.bf16.mxu1 %v3535_v59  ;;  %3264 = vmatprep.mubr.msk.bf16.mxu1 %vm3536_vm7, %v3535_v59 }
 0xbe3   : > { %v2487_v50 = vmul.f32 0.044715, %v2479_v49  ;;  %3261 = vmatpush3.bf16.msra.mxu1 %v2724_v37 }
 0xbe4   : > { %3464 = vtanh.f32 %v2504_v19  ;;  %v2502_v5 = vmul.f32 0.7978846, %v2494_v18  ;;  %v2497_v52 = vadd.f32 %v2489_v6, %v4293_v41  ;;  %3262 = vmatprep.subr.bf16.mxu1 %v3535_v59 }
 0xbe5   : > { %v2495_v45 = vadd.f32 %v2487_v50, %v2455_v62 }
 0xbe6   : > { %3466 = vtanh.f32 %v2502_v5  ;;  %v2505_v42 = vmul.f32 0.7978846, %v2497_v52 }
 0xbe7   : > { %v2503_v12 = vmul.f32 0.7978846, %v2495_v45 }
 0xbe8   : > { %3468 = vtanh.f32 %v2505_v42  ;;  %v3457_v25 = vpop.eup %3456 }
 0xbe9   : > { %3470 = vtanh.f32 %v2503_v12  ;;  %v2516_v60 = vadd.f32 1.0, %v3457_v25 }
 0xbea   : > { %v3459_v32 = vpop.eup %3458 }
 0xbeb   : > { %v2514_v27 = vadd.f32 1.0, %v3459_v32  ;;  %v2524_v14 = vmul.f32 0.5, %v2516_v60 }
 0xbec   : > { %v3461_v33 = vpop.eup %3460 }
 0xbed   : > { %v2517_v38 = vadd.f32 1.0, %v3461_v33  ;;  %v2522_v36 = vmul.f32 0.5, %v2514_v27  ;;  %v2532_v7 = vmul.f32 %v2524_v14, %v4261_v57 }
 0xbee   : > { %v3463_v8 = vpop.eup %3462 }
 0xbef   : > { %v2525_v44 = vmul.f32 0.5, %v2517_v38  ;;  %v2515_v9 = vadd.f32 1.0, %v3463_v8  ;;  %v2530_v58 = vmul.f32 %v2522_v36, %v4265_v43 }
 0xbf1   : > { %v3465_v11 = vpop.eup %3464  ;;  %v2523_v15 = vmul.f32 0.5, %v2515_v9  ;;  %v2533_v63 = vmul.f32 %v2525_v44, %v4270_v4 }
 0xbf2   : > { %v2520_v31 = vadd.f32 1.0, %v3465_v11 }
 0xbf3   : > { %v3467_v2 = vpop.eup %3466  ;;  %v2531_v56 = vmul.f32 %v2523_v15, %v4275_v13  ;;  %v2539_v23 = vpack.c.bf16 %v2533_v63, %v2532_v7 }
 0xbf4   : > { %v2518_v10 = vadd.f32 1.0, %v3467_v2  ;;  %v2528_v4 = vmul.f32 0.5, %v2520_v31 }
 0xbf5   : > { %v3469_v20 = vpop.eup %3468  ;;  %v2538_v22 = vpack.c.bf16 %v2531_v56, %v2530_v58 }
 0xbf6   : > { %v3471_v55 = vpop.eup %3470  ;;  %v2521_v1 = vadd.f32 1.0, %v3469_v20  ;;  %v2526_v61 = vmul.f32 0.5, %v2518_v10  ;;  %v2536_v34 = vmul.f32 %v2528_v4, %v4281_v16  ;;  %v3359_v16 = vld [vmem:[%s4406_s16] sm:$0xff]  }
 0xbf7   : > { %v2519_v0 = vadd.f32 1.0, %v3471_v55  ;;  %3252 = vmatprep.mubr.msk.bf16.mxu0 %vm2597_vm6, %v2538_v22  ;;  %3263 = vmatpush3.bf16.msra.mxu1 %v3359_v16 }
 0xbf8   : > { %v2529_v26 = vmul.f32 0.5, %v2521_v1  ;;  %3253 = vmatmul.mubr.msk.bf16.vlgmr.msra.gmra.mxu0 %vm2597_vm6, %v2539_v23  ;;  %v2534_v57 = vmul.f32 %v2526_v61, %v4287_v21 }
 0xbf9   : > { %v2527_v43 = vmul.f32 0.5, %v2519_v0 }
 0xbfa   : > { %v2537_v13 = vmul.f32 %v2529_v26, %v4293_v41  ;;  %v2957_v41 = vld [vmem:[%s4405_s15] ss:$0 sm:$0xff] }
 0xbfb   : > { %v2535_v30 = vmul.f32 %v2527_v43, %v2455_v62 }
 0xbfc   : > { %v2541_v40 = vpack.c.bf16 %v2537_v13, %v2536_v34 }
 0xbfd   : > { %v2540_v48 = vpack.c.bf16 %v2535_v30, %v2534_v57 }
 0xbff   : > { %3256 = vmatprep.mubr.msk.bf16.mxu0 %vm2597_vm6, %v2540_v48 }
 0xc00   : > { %3257 = vmatmul.mubr.msk.bf16.gmra.mxu0 %vm2597_vm6, %v2541_v40 }
 0xcb8   : > { %v3254_v21 = vpop.f32.mrf.mxu0 }
 0xcb9   : > { %v2653_v47 = vadd.f32 %v3254_v21, %v2957_v41 }
 0xcba   : > { %v2644_v62 = vpop.f32.mrf.mxu0 }
 0xcbb   : > { %v2645_v39 = vadd.f32 %v2957_v41, %v2644_v62  ;;  %v2677_v5 = vadd.f32 %v2653_v47, %v4130_v24 }
 0xcbc   : > { %v3255_v46 = vpop.f32.mrf.mxu0 }
 0xcbd   : > { %v2675_v19 = vadd.f32 %v2645_v39, %v4128_v17  ;;  %v2656_v18 = vadd.f32 %v3255_v46, %v2957_v41  ;;  %v2686_v60 = vsel %vm781_vm1, %v2677_v5, 0.0 }
 0xcbe   : > { %v2647_v49 = vpop.f32.mrf.mxu0 }
 0xcbf   : > { %v2648_v6 = vadd.f32 %v2957_v41, %v2647_v49  ;;  %v2683_v42 = vsel %vm781_vm1, %v2675_v19, 0.0  ;;  %v2678_v12 = vadd.f32 %v2656_v18, %v4138_v28 }
 0xcc0   : > { %v3258_v50 = vpop.f32.mrf.mxu0 }
 0xcc1   : > { %v2676_v52 = vadd.f32 %v2648_v6, %v4136_v3  ;;  %v2669_v17 = vadd.f32 %v3258_v50, %v2957_v41  ;;  %v2688_v24 = vsel %vm781_vm1, %v2678_v12, 0.0 }
 0xcc2   : > { %v2660_v45 = vpop.f32.mrf.mxu0 }
 0xcc3   : > { %v2684_v25 = vsel %vm781_vm1, %v2676_v52, 0.0  ;;  %v2661_v32 = vadd.f32 %v2957_v41, %v2660_v45  ;;  %v2681_v14 = vadd.f32 %v2669_v17, %v4150_v51 }
 0xcc4   : > { %v2685_v27 = vadd.f32 %v2684_v25, %v2683_v42  ;;  %v3259_v33 = vpop.f32.mrf.mxu0 }
 0xcc5   : > { %v2679_v38 = vadd.f32 %v2661_v32, %v4146_v29  ;;  %v2672_v3 = vadd.f32 %v3259_v33, %v2957_v41  ;;  %v2694_v58 = vsel %vm781_vm1, %v2681_v14, 0.0 }
 0xcc6   : > { %v2687_v8 = vadd.f32 %v2686_v60, %v2685_v27  ;;  %v2663_v36 = vpop.f32.mrf.mxu0 }
 0xcc7   : > { %v2664_v44 = vadd.f32 %v2957_v41, %v2663_v36  ;;  %v2690_v28 = vsel %vm781_vm1, %v2679_v38, 0.0  ;;  %v2682_v63 = vadd.f32 %v2672_v3, %v4158_v54  ;;  %v2710_v54 = vld [vmem:[%s4407_s17] sm:$0x1] }
 0xcc8   : > { %v2689_v9 = vadd.f32 %v2688_v24, %v2687_v8 }
 0xcc9   : > { %v2680_v11 = vadd.f32 %v2664_v44, %v4156_v53  ;;  %v2696_v7 = vsel %vm781_vm1, %v2682_v63, 0.0 }
 0xcca   : > { %v2691_v15 = vadd.f32 %v2690_v28, %v2689_v9 }
 0xccb   : > { %v2692_v2 = vsel %vm781_vm1, %v2680_v11, 0.0 }
 0xccc   : > { %v2693_v29 = vadd.f32 %v2692_v2, %v2691_v15 }
 0xcce   : > { %v2695_v56 = vadd.f32 %v2694_v58, %v2693_v29 }
 0xcd0   : > { %v2697_v31 = vadd.f32 %v2696_v7, %v2695_v56 }
 0xcd2   : > { %v2698_v10 = vrot.slane %v2697_v31, 4 }
 0xcd4   : > { %v2699_v51 = vadd.f32 %v2698_v10, %v2697_v31 }
 0xcd6   : > { %v2700_v20 = vrot.slane %v2699_v51, 2 }
 0xcd8   : > { %v2701_v22 = vadd.f32 %v2700_v20, %v2699_v51 }
 0xcda   : > { %v2702_v55 = vrot.slane %v2701_v22, 1 }
 0xcdc   : > { %v2703_v53 = vadd.f32 %v2702_v55, %v2701_v22 }
 0xcde   : > { %v2705_v23 = vmul.f32 0.015625, %v2703_v53 }
 0xce0   : > { %v2706_v1 = vpack.c.bf16 %v2705_v23, %v2705_v23 }
 0xce2   : > { %3265 = vmatmul.mubr.msk.bf16.vlgmr.msra.gmra.mxu1 %vm781_vm1, %v2706_v1 }
 0xda2   : > { %v2760_v61 = vpop.f32.mrf.mxu1 }
 0xda3   : > { %v2761_v0 = vadd.f32 %v2760_v61, %v2710_v54 }
 0xda4   : > { %v3266_v4 = vpop.f32.mrf.mxu1 }
 0xda5   : > { %2766 = vst [vmem:[%s567_s19] sm:$0x1] %v2761_v0 }
 0xda6   : > { %v2763_v26 = vpop.f32.mrf.mxu1 }
 0xda7   : > { %3485 = shalt.err (!%p3482_p3)
}
 0xda8   : > { %s3486_s25 = scalar_lea.hbm %s4349_s22, 16  ;;  %s3490_s1 = scalar_lea.hbm %s4408_s18, 32 }
 0xda9   : > { %p3487_p4 = scmp.ne.s32.totalorder %s4349_s22, %s3486_s25  ;;  %p3491_p9 = scmp.lt.s32.totalorder %s4349_s22, %s4408_s18 }
 0xdaa   : > { %p3492_p10 = scmp.lt.s32.totalorder %s3490_s1, %s3486_s25 }
 0xdab   : > { %p3488_p7 = pnand %p3487_p4, %p3671_p5 }
 0xdac   : > { %p3493_p11 = por %p3492_p10, %p3491_p9 }
 0xdad   : > { %p3489_p8 = pneg %p3488_p7 }
 0xdaf   : > { %p3494_p12 = pnand %p3493_p11, %p3489_p8 }
 0xdb1   : > { %3497 = shalt.err (!%p3494_p12)
}
 0xdb2   : > { %3285 = dma.vmem_to_hbm [thread:$0]  (%p3671_p5), %s4351_s20, 16, %s4349_s22, %s2768_s23   ;;  %v3267_v43 = vpop.f32.mrf.mxu1 }
 0xdb3 PF: > { %s4430_s24 = sld [smem:[#allocation5_spill]]  ;;  %p3291_p13 = scmp.ge.s32.totalorder %s3532_s30, 2 }
 0xdb5   : > { %p3288_p0 = pnand %p3291_p13, %p3675_p6 }
 0xdb7   : > { %p3289_p1 = pneg %p3288_p0 }
 0xdb9   : > { %s2792_s29 = sand.u32 1, %s4430_s24  }
 0xdba   : > { %s2793_s3 = scalar_lea.sflag [#allocation3], %s2792_s29 }
 0xdbb   : > { %3515 = dma.done.wait (%p3289_p1), %s2793_s3, 16  }
 0xdbc   : > { %3517 = vsyncadd (%p3289_p1), %s2793_s3, 4294967280  ;;  %s4432_s30 = sld [smem:[#allocation7_spill]]  ;;  %s4435_s27 = smov %s3524_s28 }
 0xdbd   : > { %s4433_s25 = sld [smem:[#allocation6_spill]] }
 0xdbe   : > { %s4434_s29 = sld [smem:[#allocation8_spill]] }
 0xdc2   : > { %p28_p2 = scmp.ge.s32.totalorder %s4432_s30, 4  }
 0xdc3   : > { %s4436_s28 = smov %s4433_s25 }
 0xdc4   :  { %30 = sbr.rel (!%p28_p2) target bundleno = 8 (0x8), region = 138 }
 0xdc9   :  { %2797 = vsyncpa [#allocation3], 1 }
 0xdca   :  { %2799 = vsyncpa [#allocation3 + $0x1], 1 }

</bundles_post_ra>
